<compile_context>
chip_gen: v7x
topology: tpu7x:2x2x1
jax: 0.10.0
libtpu: 0.0.40
codegen_flags: <defaults>
</compile_context>

<pallas_src>
import functools
import math

import jax
import jax.numpy as jnp
from jax.experimental import pallas as pl
from jax.experimental.pallas import tpu as pltpu


# --------------------------------------------------------------------------- #
# Fused kernel: one batch element per grid step.
# --------------------------------------------------------------------------- #
def _aen_fused_kernel(ctx_ref, tgt_ref, clen_ref, tlen_ref, w_ref, b_ref, o_ref,
                      *, cfg, lt_real):
    f32, bf16 = jnp.float32, jnp.bfloat16

    def w_mat(off, rows, cols):                    # static bf16 weight view
        return w_ref[off:off + rows, :cols]

    def b_row(idx, cols):                          # (1, cols) f32 bias row
        return b_ref[idx][:, :cols]

    def mha_mlp(k, q, mp):
        """Multi-head attention with score_function='mlp', all heads batched."""
        E, nH, hid, D, out = mp['E'], mp['nH'], mp['hid'], mp['D'], mp['out']
        Lk, Lq = k.shape[0], q.shape[0]
        kb, qb = k.astype(bf16), q.astype(bf16)

        # k-side projection; folded k-score columns appended:
        #   kall[:, :D] = kx (all heads, head-major columns), kall[:, D:] = ksc
        kall = jnp.dot(kb, w_mat(mp['wkall'], E, D + nH),
                       preferred_element_type=f32) + b_row(mp['bkall'], D + nH)
        kx = kall[:, :D]                                       # (Lk, D)
        ksc_t = kall[:, D:].T                                  # (nH, Lk)

        # q-side: only the folded score projection is needed (qx never feeds output).
        qsc = jnp.dot(qb, w_mat(mp['wqs'], E, nH),
                      preferred_element_type=f32) + b_row(mp['bqs'], nH)
        qsc_t = qsc.T                                          # (nH, Lq)

        # All-head scores; tanh bounds them to [-1, 1] so no max-subtraction needed.
        score = jnp.tanh(qsc_t[:, :, None] + ksc_t[:, None, :])      # (nH, Lq, Lk)
        e = jnp.exp(score)
        attn = e * pl.reciprocal(jnp.sum(e, axis=-1, keepdims=True), approx=True)

        # All-head weighted sum via ONE MXU matmul: (nH*Lq, Lk) @ (Lk, D) computes
        # every (head, head') pair; the iota block-mask + head-sum keeps only the
        # matching-head diagonal blocks == concatenation of per-head outputs.
        a_flat = attn.reshape(nH * Lq, Lk).astype(bf16)
        full = jnp.dot(a_flat, kx.astype(bf16),
                       preferred_element_type=f32).reshape(nH, Lq, D)
        h_idx = jax.lax.broadcasted_iota(jnp.int32, (nH, Lq, D), 0)
        col = jax.lax.broadcasted_iota(jnp.int32, (nH, Lq, D), 2)
        in_block = (col >= h_idx * hid) & (col < (h_idx + 1) * hid)
        concat = jnp.sum(jnp.where(in_block, full, 0.0), axis=0)     # (Lq, D)

        # Single output projection over the concatenated heads.
        return jnp.dot(concat.astype(bf16), w_mat(mp['wp'], D, out),
                       preferred_element_type=f32) + b_row(mp['bp'], out)

    def ffn(x, fp):
        """PositionwiseFeedForward: relu(x@W1+b1)@W2+b2 (Conv1d k=1 equivalent)."""
        H = fp['H']
        h1 = jnp.dot(x.astype(bf16), w_mat(fp['w1'], H, H),
                     preferred_element_type=f32) + b_row(fp['b1'], H)
        h1 = jnp.maximum(h1, 0.0)
        return jnp.dot(h1.astype(bf16), w_mat(fp['w2'], H, H),
                       preferred_element_type=f32) + b_row(fp['b2'], H)

    def seq_sum(x, valid_rows):
        if valid_rows == x.shape[0]:
            return jnp.sum(x, axis=0, keepdims=True)
        row = jax.lax.broadcasted_iota(jnp.int32, x.shape, 0)
        return jnp.sum(jnp.where(row < valid_rows, x, 0.0), axis=0, keepdims=True)

    ctx = ctx_ref[0]                               # (Lc, E)      f32
    tgt = tgt_ref[0]                               # (Lt_pad, E)  f32
    clen = clen_ref[0]                             # (1, 1)
    tlen = tlen_ref[0]                             # (1, 1)

    hc = ffn(mha_mlp(ctx, ctx, cfg['attn_k']), cfg['ffn_c'])     # (Lc, H)
    ht = ffn(mha_mlp(ctx, tgt, cfg['attn_q']), cfg['ffn_t'])     # (Lt_pad, H)
    s1 = mha_mlp(hc, ht, cfg['attn_s1'])                         # (Lt_pad, H)

    hc_mean = seq_sum(hc, hc.shape[0]) / clen
    ht_mean = seq_sum(ht, lt_real) / tlen
    s1_mean = seq_sum(s1, lt_real) / clen          # reference divides s1 by context_len
    feat = jnp.concatenate([hc_mean, s1_mean, ht_mean], axis=1)  # (1, 3H)

    H, out_pad = cfg['H'], cfg['out_pad']
    logits = jnp.dot(feat.astype(bf16), w_mat(cfg['wd'], 3 * H, out_pad),
                     preferred_element_type=f32) + b_row(cfg['bd'], out_pad)
    o_ref[0] = logits                              # lane-dense (1, 128) store


# --------------------------------------------------------------------------- #
# pallas_call wrapper
# --------------------------------------------------------------------------- #
def aen_glove_fused(ctx, tgt, clen, tlen, w_slab, b_slab, cfg, lt_real):
    B, Lc, E = ctx.shape
    _, Ltp, _ = tgt.shape
    out_pad = cfg['out_pad']
    kernel = functools.partial(_aen_fused_kernel, cfg=cfg, lt_real=lt_real)
    out = pl.pallas_call(
        kernel,
        out_shape=jax.ShapeDtypeStruct((B, 1, out_pad), jnp.float32),
        grid=(B,),
        in_specs=[
            pl.BlockSpec((1, Lc, E), lambda b: (b, 0, 0)),
            pl.BlockSpec((1, Ltp, E), lambda b: (b, 0, 0)),
            pl.BlockSpec((1, 1, 1), lambda b: (b, 0, 0)),
            pl.BlockSpec((1, 1, 1), lambda b: (b, 0, 0)),
            pl.BlockSpec(w_slab.shape, lambda b: (0, 0)),        # replicated weights (bf16)
            pl.BlockSpec(b_slab.shape, lambda b: (0, 0, 0)),     # replicated biases (f32)
        ],
        out_specs=pl.BlockSpec((1, 1, out_pad), lambda b: (b, 0, 0)),
        compiler_params=pltpu.CompilerParams(dimension_semantics=("parallel",)),
    )(ctx, tgt, clen, tlen, w_slab, b_slab)
    return out.reshape(B, out_pad)[:, :cfg['P']]


# --------------------------------------------------------------------------- #
# Parameter packing: fold MLP-score weights into projections, pack into 2 slabs.
# --------------------------------------------------------------------------- #
class _SlabPacker:
    """Stacks 2-D weight blocks into one (rows, width) slab; returns static row offsets."""

    def __init__(self, width=128, row_align=16):
        self.width, self.row_align = width, row_align
        self.blocks, self.rows = [], 0

    def add(self, mat):
        mat = jnp.asarray(mat, jnp.float32)
        r, c = mat.shape
        assert c <= self.width
        rp = ((r + self.row_align - 1) // self.row_align) * self.row_align
        self.blocks.append(jnp.zeros((rp, self.width), jnp.float32).at[:r, :c].set(mat))
        off = self.rows
        self.rows += rp
        return off

    def finalize(self, dtype):
        return jnp.concatenate(self.blocks, axis=0).astype(dtype)


class _BiasPacker:
    """Stacks 1-D bias vectors as zero-padded rows of an (n, 1, width) f32 slab."""

    def __init__(self, width=128):
        self.width, self.rows = width, []

    def add(self, vec):
        vec = jnp.asarray(vec, jnp.float32).reshape(-1)
        assert vec.shape[0] <= self.width
        self.rows.append(jnp.zeros((self.width,), jnp.float32).at[:vec.shape[0]].set(vec))
        return len(self.rows) - 1

    def finalize(self):
        return jnp.stack(self.rows, axis=0)[:, None, :]


def _fold_attention(ap):
    """Fold the shared MLP-score weight into the k/q projections (host-side, free)."""
    E, nH, hid = ap['embed_dim'], ap['n_head'], ap['hid']
    wsk, wsq = ap['w_score'][:hid], ap['w_score'][hid:]
    wk3 = ap['wk'].reshape(E, nH, hid)
    wq3 = ap['wq'].reshape(E, nH, hid)
    w_ks = jnp.einsum('ehd,d->eh', wk3, wsk)               # (E, nH)
    w_qs = jnp.einsum('ehd,d->eh', wq3, wsq)               # (E, nH)
    b_ks = ap['bk'].reshape(nH, hid) @ wsk                 # (nH,)
    b_qs = ap['bq'].reshape(nH, hid) @ wsq                 # (nH,)
    w_kall = jnp.concatenate([ap['wk'], w_ks], axis=1)     # (E, nH*hid + nH)
    b_kall = jnp.concatenate([ap['bk'], b_ks], axis=0)     # (nH*hid + nH,)
    return w_kall, b_kall, w_qs, b_qs


def pack_params(params, lane_width=128):
    wpk = _SlabPacker(width=lane_width, row_align=16)      # bf16 (16,128) tile aligned
    bpk = _BiasPacker(width=lane_width)

    def pack_attn(ap):
        E, nH, hid, out = ap['embed_dim'], ap['n_head'], ap['hid'], ap['out_dim']
        D = nH * hid
        w_kall, b_kall, w_qs, b_qs = _fold_attention(ap)
        return dict(E=E, nH=nH, hid=hid, D=D, out=out,
                    wkall=wpk.add(w_kall), bkall=bpk.add(b_kall),
                    wqs=wpk.add(w_qs), bqs=bpk.add(b_qs),
                    wp=wpk.add(ap['wp']), bp=bpk.add(ap['bp']))

    def pack_ffn(fp):
        H = int(fp['w1'].shape[0])
        return dict(H=H, w1=wpk.add(fp['w1']), b1=bpk.add(fp['b1']),
                    w2=wpk.add(fp['w2']), b2=bpk.add(fp['b2']))

    cfg = {
        'attn_k': pack_attn(params['attn_k']),
        'attn_q': pack_attn(params['attn_q']),
        'ffn_c': pack_ffn(params['ffn_c']),
        'ffn_t': pack_ffn(params['ffn_t']),
        'attn_s1': pack_attn(params['attn_s1']),
        'wd': wpk.add(params['dense']['wd']),
        'bd': bpk.add(params['dense']['bd']),
        'H': int(params['ffn_c']['w1'].shape[0]),
        'P': int(params['dense']['wd'].shape[1]),
        'out_pad': lane_width,
    }
    return wpk.finalize(jnp.bfloat16), bpk.finalize(), cfg


# --------------------------------------------------------------------------- #
# Parameter initialisation (deterministic, mirrors the PyTorch module's shapes)
# --------------------------------------------------------------------------- #
def _uniform(key, shape, bound):
    return jax.random.uniform(key, shape, jnp.float32, -bound, bound)


def init_attention_params(key, embed_dim, n_head, hid, out_dim):
    d = n_head * hid
    ks = jax.random.split(key, 7)
    lb = 1.0 / math.sqrt(embed_dim)
    pb = 1.0 / math.sqrt(d)
    sb = 1.0 / math.sqrt(hid)
    return {
        'wk': _uniform(ks[0], (embed_dim, d), lb),     # nn.Linear(embed_dim, n_head*hid)
        'bk': _uniform(ks[1], (d,), lb),
        'wq': _uniform(ks[2], (embed_dim, d), lb),
        'bq': _uniform(ks[3], (d,), lb),
        'wp': _uniform(ks[4], (d, out_dim), pb),       # nn.Linear(n_head*hid, out_dim)
        'bp': _uniform(ks[5], (out_dim,), pb),
        'w_score': _uniform(ks[6], (2 * hid,), sb),    # shared MLP-score weight (2*hid,)
        'embed_dim': embed_dim, 'n_head': n_head, 'hid': hid, 'out_dim': out_dim,
    }


def init_ffn_params(key, d_hid):
    ks = jax.random.split(key, 4)
    b = 1.0 / math.sqrt(d_hid)
    return {'w1': _uniform(ks[0], (d_hid, d_hid), b), 'b1': _uniform(ks[1], (d_hid,), b),
            'w2': _uniform(ks[2], (d_hid, d_hid), b), 'b2': _uniform(ks[3], (d_hid,), b)}


def init_dense_params(key, hidden_dim, polarities_dim):
    ks = jax.random.split(key, 2)
    b = 1.0 / math.sqrt(3 * hidden_dim)
    return {'wd': _uniform(ks[0], (3 * hidden_dim, polarities_dim), b),
            'bd': _uniform(ks[1], (polarities_dim,), b)}


def init_params(key, vocab, embed_dim, hidden_dim, n_head, polarities_dim):
    ks = jax.random.split(key, 7)
    emb = jax.random.normal(ks[0], (vocab, embed_dim), jnp.float32) * 0.1
    emb = emb.at[0].set(0.0)   # pad row
    return {
        'embedding': emb,
        'attn_k': init_attention_params(ks[1], embed_dim, n_head,
                                        embed_dim // n_head, hidden_dim),
        'attn_q': init_attention_params(ks[2], embed_dim, n_head,
                                        embed_dim // n_head, hidden_dim),
        'ffn_c': init_ffn_params(ks[3], hidden_dim),
        'ffn_t': init_ffn_params(ks[4], hidden_dim),
        'attn_s1': init_attention_params(ks[5], hidden_dim, n_head,
                                         hidden_dim // n_head, hidden_dim),
        'dense': init_dense_params(ks[6], hidden_dim, polarities_dim),
    }


# --------------------------------------------------------------------------- #
# Full forward pass (JAX glue: embedding gather + masking; everything else fused)
# --------------------------------------------------------------------------- #
def aen_glove_forward(embedding, w_slab, b_slab, cfg, text_raw_indices, target_indices):
    ctx_mask = (text_raw_indices != 0).astype(jnp.float32)
    tgt_mask = (target_indices != 0).astype(jnp.float32)
    # Embedding lookup + SqueezeEmbedding: padded positions become zero vectors.
    # TODO(synk): SqueezeEmbedding's dynamic truncation to the batch-max length is a
    # dynamic-shape op; test inputs are built so the batch-max length equals the padded
    # buffer length, making zero-masking exactly equivalent (pad_packed_sequence semantics).
    ctx = embedding[text_raw_indices] * ctx_mask[..., None]
    tgt = embedding[target_indices] * tgt_mask[..., None]
    clen = jnp.sum(ctx_mask, axis=-1)
    tlen = jnp.sum(tgt_mask, axis=-1)

    B, Lt, _ = tgt.shape
    lt_pad = ((Lt + 7) // 8) * 8          # target is query-only: padding rows is exact
    if lt_pad != Lt:                      # (padded rows are masked out of the pooling)
        tgt = jnp.pad(tgt, ((0, 0), (0, lt_pad - Lt), (0, 0)))

    return aen_glove_fused(ctx, tgt,
                           clen.reshape(B, 1, 1), tlen.reshape(B, 1, 1),
                           w_slab, b_slab, cfg, lt_real=Lt)


# --------------------------------------------------------------------------- #
if __name__ == "__main__":
    B, Lc, Lt = 2, 8, 4
    VOCAB, EMBED_DIM, HIDDEN_DIM, N_HEAD, POLARITIES = 50, 48, 32, 8, 3

    key = jax.random.PRNGKey(0)
    k_par, k_txt, k_tgt = jax.random.split(key, 3)

    params = init_params(k_par, VOCAB, EMBED_DIM, HIDDEN_DIM, N_HEAD, POLARITIES)
    w_slab, b_slab, cfg = pack_params(params)

    # Left-aligned token indices with trailing 0-padding; longest sequence fills the
    # buffer so SqueezeEmbedding reduces to zero-masking.
    text_raw_indices = jax.random.randint(k_txt, (B, Lc), 1, VOCAB)
    ctx_lens = jnp.array([Lc, 5])
    text_raw_indices = jnp.where(jnp.arange(Lc)[None, :] < ctx_lens[:, None],
                                 text_raw_indices, 0)

    target_indices = jax.random.randint(k_tgt, (B, Lt), 1, VOCAB)
    tgt_lens = jnp.array([Lt, 2])
    target_indices = jnp.where(jnp.arange(Lt)[None, :] < tgt_lens[:, None],
                               target_indices, 0)

    out = aen_glove_forward(params['embedding'], w_slab, b_slab, cfg,
                            text_raw_indices, target_indices)
    out = jax.block_until_ready(out)
    assert out.shape == (B, POLARITIES)
    print("KERNEL_OK")
</pallas_src>

<mosaic_0001>
module attributes {stable_mosaic.version = 11 : i64} {
  func.func @_aen_fused_kernel(%arg0: i32, %arg1: memref<1x8x48xf32, #tpu.memory_space<vmem>>, %arg2: memref<1x8x48xf32, #tpu.memory_space<vmem>>, %arg3: memref<1x1x1xf32, #tpu.memory_space<vmem>>, %arg4: memref<1x1x1xf32, #tpu.memory_space<vmem>>, %arg5: memref<608x128xbf16, #tpu.memory_space<vmem>>, %arg6: memref<14x1x128xf32, #tpu.memory_space<vmem>>, %arg7: memref<1x1x128xf32, #tpu.memory_space<vmem>>) attributes {dimension_semantics = [#tpu.dimension_semantics<parallel>], iteration_bounds = array<i64: 2>, scalar_prefetch = 0 : i64, scratch_operands = 0 : i64, tpu.core_type = #tpu.core_type<tc>, window_params = [{transform_indices = @transform_0, window_bounds = array<i64: 1, 8, 48>}, {transform_indices = @transform_1, window_bounds = array<i64: 1, 8, 48>}, {transform_indices = @transform_2, window_bounds = array<i64: 1, 1, 1>}, {transform_indices = @transform_3, window_bounds = array<i64: 1, 1, 1>}, {pipeline_mode = #tpu.pipeline_mode<synchronous>, transform_indices = @transform_4, window_bounds = array<i64: 608, 128>}, {pipeline_mode = #tpu.pipeline_mode<synchronous>, transform_indices = @transform_5, window_bounds = array<i64: 14, 1, 128>}, {transform_indices = @transform_6, window_bounds = array<i64: 1, 1, 128>}]} {
    %c0 = arith.constant 0 : index
    %c0_0 = arith.constant 0 : index
    %c0_1 = arith.constant 0 : index
    %0 = vector.load %arg1[%c0, %c0_0, %c0_1] : memref<1x8x48xf32, #tpu.memory_space<vmem>>, vector<1x8x48xf32>
    %1 = vector.shape_cast %0 : vector<1x8x48xf32> to vector<8x48xf32>
    %c0_2 = arith.constant 0 : index
    %c0_3 = arith.constant 0 : index
    %c0_4 = arith.constant 0 : index
    %2 = vector.load %arg2[%c0_2, %c0_3, %c0_4] : memref<1x8x48xf32, #tpu.memory_space<vmem>>, vector<1x8x48xf32>
    %3 = vector.shape_cast %2 : vector<1x8x48xf32> to vector<8x48xf32>
    %c0_5 = arith.constant 0 : index
    %c0_6 = arith.constant 0 : index
    %c0_7 = arith.constant 0 : index
    %4 = vector.load %arg3[%c0_5, %c0_6, %c0_7] : memref<1x1x1xf32, #tpu.memory_space<vmem>>, vector<1x1x1xf32>
    %5 = vector.shape_cast %4 : vector<1x1x1xf32> to vector<1x1xf32>
    %c0_8 = arith.constant 0 : index
    %c0_9 = arith.constant 0 : index
    %c0_10 = arith.constant 0 : index
    %6 = vector.load %arg4[%c0_8, %c0_9, %c0_10] : memref<1x1x1xf32, #tpu.memory_space<vmem>>, vector<1x1x1xf32>
    %7 = vector.shape_cast %6 : vector<1x1x1xf32> to vector<1x1xf32>
    %8 = arith.truncf %1 : vector<8x48xf32> to vector<8x48xbf16>
    %9 = arith.truncf %1 : vector<8x48xf32> to vector<8x48xbf16>
    %c0_11 = arith.constant 0 : index
    %c0_12 = arith.constant 0 : index
    %10 = vector.load %arg5[%c0_11, %c0_12] : memref<608x128xbf16, #tpu.memory_space<vmem>>, vector<48x56xbf16>
    %cst = arith.constant dense<0.000000e+00> : vector<8x56xf32>
    %11 = tpu.matmul %8, %10, %cst {dimension_numbers = #tpu.dot_dimension_numbers<[1], [0], [0], [1], [0, 0, 1, 1], [], []>} : vector<8x48xbf16>, vector<48x56xbf16>, vector<8x56xf32> -> vector<8x56xf32>
    %c0_13 = arith.constant 0 : index
    %c0_14 = arith.constant 0 : index
    %c0_15 = arith.constant 0 : index
    %12 = vector.load %arg6[%c0_13, %c0_14, %c0_15] : memref<14x1x128xf32, #tpu.memory_space<vmem>>, vector<1x1x128xf32>
    %13 = vector.shape_cast %12 : vector<1x1x128xf32> to vector<1x128xf32>
    %14 = vector.extract_strided_slice %13 {offsets = [0, 0], sizes = [1, 56], strides = [1, 1]} : vector<1x128xf32> to vector<1x56xf32>
    %15 = vector.broadcast %14 : vector<1x56xf32> to vector<8x56xf32>
    %16 = arith.addf %11, %15 : vector<8x56xf32>
    %17 = vector.extract_strided_slice %16 {offsets = [0, 0], sizes = [8, 48], strides = [1, 1]} : vector<8x56xf32> to vector<8x48xf32>
    %18 = vector.extract_strided_slice %16 {offsets = [0, 48], sizes = [8, 8], strides = [1, 1]} : vector<8x56xf32> to vector<8x8xf32>
    %19 = tpu.transpose %18, [1, 0] : vector<8x8xf32> -> vector<8x8xf32>
    %c48 = arith.constant 48 : index
    %c0_16 = arith.constant 0 : index
    %20 = vector.load %arg5[%c48, %c0_16] : memref<608x128xbf16, #tpu.memory_space<vmem>>, vector<48x8xbf16>
    %cst_17 = arith.constant dense<0.000000e+00> : vector<8x8xf32>
    %21 = tpu.matmul %9, %20, %cst_17 {dimension_numbers = #tpu.dot_dimension_numbers<[1], [0], [0], [1], [0, 0, 1, 1], [], []>} : vector<8x48xbf16>, vector<48x8xbf16>, vector<8x8xf32> -> vector<8x8xf32>
    %c1 = arith.constant 1 : index
    %c0_18 = arith.constant 0 : index
    %c0_19 = arith.constant 0 : index
    %22 = vector.load %arg6[%c1, %c0_18, %c0_19] : memref<14x1x128xf32, #tpu.memory_space<vmem>>, vector<1x1x128xf32>
    %23 = vector.shape_cast %22 : vector<1x1x128xf32> to vector<1x128xf32>
    %24 = vector.extract_strided_slice %23 {offsets = [0, 0], sizes = [1, 8], strides = [1, 1]} : vector<1x128xf32> to vector<1x8xf32>
    %25 = vector.broadcast %24 : vector<1x8xf32> to vector<8x8xf32>
    %26 = arith.addf %21, %25 : vector<8x8xf32>
    %27 = tpu.transpose %26, [1, 0] : vector<8x8xf32> -> vector<8x8xf32>
    %28 = vector.shape_cast %27 : vector<8x8xf32> to vector<8x8x1xf32>
    %29 = vector.shape_cast %19 : vector<8x8xf32> to vector<8x1x8xf32>
    %30 = vector.broadcast %28 : vector<8x8x1xf32> to vector<8x8x8xf32>
    %31 = vector.broadcast %29 : vector<8x1x8xf32> to vector<8x8x8xf32>
    %32 = arith.addf %30, %31 : vector<8x8x8xf32>
    %33 = math.tanh %32 : vector<8x8x8xf32>
    %34 = math.exp %33 : vector<8x8x8xf32>
    %cst_20 = arith.constant dense<0.000000e+00> : vector<8x8xf32>
    %35 = vector.multi_reduction <add>, %34, %cst_20 [2] : vector<8x8x8xf32> to vector<8x8xf32>
    %36 = vector.shape_cast %35 : vector<8x8xf32> to vector<8x8x1xf32>
    %37 = tpu.reciprocal %36 {approx = true} : vector<8x8x1xf32> -> vector<8x8x1xf32>
    %38 = vector.broadcast %37 : vector<8x8x1xf32> to vector<8x8x8xf32>
    %39 = arith.mulf %34, %38 : vector<8x8x8xf32>
    %40 = vector.shape_cast %39 : vector<8x8x8xf32> to vector<64x8xf32>
    %41 = arith.truncf %40 : vector<64x8xf32> to vector<64x8xbf16>
    %42 = arith.truncf %17 : vector<8x48xf32> to vector<8x48xbf16>
    %cst_21 = arith.constant dense<0.000000e+00> : vector<64x48xf32>
    %43 = tpu.matmul %41, %42, %cst_21 {dimension_numbers = #tpu.dot_dimension_numbers<[1], [0], [0], [1], [0, 0, 1, 1], [], []>} : vector<64x8xbf16>, vector<8x48xbf16>, vector<64x48xf32> -> vector<64x48xf32>
    %44 = vector.shape_cast %43 : vector<64x48xf32> to vector<8x8x48xf32>
    %45 = tpu.iota {dimensions = array<i32: 0>} : vector<8x8x48xi32>
    %46 = tpu.iota {dimensions = array<i32: 2>} : vector<8x8x48xi32>
    %c6_i32 = arith.constant 6 : i32
    %47 = vector.broadcast %c6_i32 : i32 to vector<8x8x48xi32>
    %48 = arith.muli %45, %47 : vector<8x8x48xi32>
    %49 = arith.cmpi sge, %46, %48 : vector<8x8x48xi32>
    %c1_i32 = arith.constant 1 : i32
    %50 = vector.broadcast %c1_i32 : i32 to vector<8x8x48xi32>
    %51 = arith.addi %45, %50 : vector<8x8x48xi32>
    %c6_i32_22 = arith.constant 6 : i32
    %52 = vector.broadcast %c6_i32_22 : i32 to vector<8x8x48xi32>
    %53 = arith.muli %51, %52 : vector<8x8x48xi32>
    %54 = arith.cmpi slt, %46, %53 : vector<8x8x48xi32>
    %55 = arith.andi %49, %54 : vector<8x8x48xi1>
    %cst_23 = arith.constant 0.000000e+00 : f32
    %56 = vector.broadcast %cst_23 : f32 to vector<8x8x48xf32>
    %57 = arith.select %55, %44, %56 : vector<8x8x48xi1>, vector<8x8x48xf32>
    %cst_24 = arith.constant dense<0.000000e+00> : vector<8x48xf32>
    %58 = vector.multi_reduction <add>, %57, %cst_24 [0] : vector<8x8x48xf32> to vector<8x48xf32>
    %59 = arith.truncf %58 : vector<8x48xf32> to vector<8x48xbf16>
    %c96 = arith.constant 96 : index
    %c0_25 = arith.constant 0 : index
    %60 = vector.load %arg5[%c96, %c0_25] : memref<608x128xbf16, #tpu.memory_space<vmem>>, vector<48x32xbf16>
    %cst_26 = arith.constant dense<0.000000e+00> : vector<8x32xf32>
    %61 = tpu.matmul %59, %60, %cst_26 {dimension_numbers = #tpu.dot_dimension_numbers<[1], [0], [0], [1], [0, 0, 1, 1], [], []>} : vector<8x48xbf16>, vector<48x32xbf16>, vector<8x32xf32> -> vector<8x32xf32>
    %c2 = arith.constant 2 : index
    %c0_27 = arith.constant 0 : index
    %c0_28 = arith.constant 0 : index
    %62 = vector.load %arg6[%c2, %c0_27, %c0_28] : memref<14x1x128xf32, #tpu.memory_space<vmem>>, vector<1x1x128xf32>
    %63 = vector.shape_cast %62 : vector<1x1x128xf32> to vector<1x128xf32>
    %64 = vector.extract_strided_slice %63 {offsets = [0, 0], sizes = [1, 32], strides = [1, 1]} : vector<1x128xf32> to vector<1x32xf32>
    %65 = vector.broadcast %64 : vector<1x32xf32> to vector<8x32xf32>
    %66 = arith.addf %61, %65 : vector<8x32xf32>
    %67 = arith.truncf %66 : vector<8x32xf32> to vector<8x32xbf16>
    %c288 = arith.constant 288 : index
    %c0_29 = arith.constant 0 : index
    %68 = vector.load %arg5[%c288, %c0_29] : memref<608x128xbf16, #tpu.memory_space<vmem>>, vector<32x32xbf16>
    %cst_30 = arith.constant dense<0.000000e+00> : vector<8x32xf32>
    %69 = tpu.matmul %67, %68, %cst_30 {dimension_numbers = #tpu.dot_dimension_numbers<[1], [0], [0], [1], [0, 0, 1, 1], [], []>} : vector<8x32xbf16>, vector<32x32xbf16>, vector<8x32xf32> -> vector<8x32xf32>
    %c6 = arith.constant 6 : index
    %c0_31 = arith.constant 0 : index
    %c0_32 = arith.constant 0 : index
    %70 = vector.load %arg6[%c6, %c0_31, %c0_32] : memref<14x1x128xf32, #tpu.memory_space<vmem>>, vector<1x1x128xf32>
    %71 = vector.shape_cast %70 : vector<1x1x128xf32> to vector<1x128xf32>
    %72 = vector.extract_strided_slice %71 {offsets = [0, 0], sizes = [1, 32], strides = [1, 1]} : vector<1x128xf32> to vector<1x32xf32>
    %73 = vector.broadcast %72 : vector<1x32xf32> to vector<8x32xf32>
    %74 = arith.addf %69, %73 : vector<8x32xf32>
    %cst_33 = arith.constant 0.000000e+00 : f32
    %75 = vector.broadcast %cst_33 : f32 to vector<8x32xf32>
    %76 = arith.maximumf %74, %75 : vector<8x32xf32>
    %77 = arith.truncf %76 : vector<8x32xf32> to vector<8x32xbf16>
    %c320 = arith.constant 320 : index
    %c0_34 = arith.constant 0 : index
    %78 = vector.load %arg5[%c320, %c0_34] : memref<608x128xbf16, #tpu.memory_space<vmem>>, vector<32x32xbf16>
    %cst_35 = arith.constant dense<0.000000e+00> : vector<8x32xf32>
    %79 = tpu.matmul %77, %78, %cst_35 {dimension_numbers = #tpu.dot_dimension_numbers<[1], [0], [0], [1], [0, 0, 1, 1], [], []>} : vector<8x32xbf16>, vector<32x32xbf16>, vector<8x32xf32> -> vector<8x32xf32>
    %c7 = arith.constant 7 : index
    %c0_36 = arith.constant 0 : index
    %c0_37 = arith.constant 0 : index
    %80 = vector.load %arg6[%c7, %c0_36, %c0_37] : memref<14x1x128xf32, #tpu.memory_space<vmem>>, vector<1x1x128xf32>
    %81 = vector.shape_cast %80 : vector<1x1x128xf32> to vector<1x128xf32>
    %82 = vector.extract_strided_slice %81 {offsets = [0, 0], sizes = [1, 32], strides = [1, 1]} : vector<1x128xf32> to vector<1x32xf32>
    %83 = vector.broadcast %82 : vector<1x32xf32> to vector<8x32xf32>
    %84 = arith.addf %79, %83 : vector<8x32xf32>
    %85 = arith.truncf %1 : vector<8x48xf32> to vector<8x48xbf16>
    %86 = arith.truncf %3 : vector<8x48xf32> to vector<8x48xbf16>
    %c144 = arith.constant 144 : index
    %c0_38 = arith.constant 0 : index
    %87 = vector.load %arg5[%c144, %c0_38] : memref<608x128xbf16, #tpu.memory_space<vmem>>, vector<48x56xbf16>
    %cst_39 = arith.constant dense<0.000000e+00> : vector<8x56xf32>
    %88 = tpu.matmul %85, %87, %cst_39 {dimension_numbers = #tpu.dot_dimension_numbers<[1], [0], [0], [1], [0, 0, 1, 1], [], []>} : vector<8x48xbf16>, vector<48x56xbf16>, vector<8x56xf32> -> vector<8x56xf32>
    %c3 = arith.constant 3 : index
    %c0_40 = arith.constant 0 : index
    %c0_41 = arith.constant 0 : index
    %89 = vector.load %arg6[%c3, %c0_40, %c0_41] : memref<14x1x128xf32, #tpu.memory_space<vmem>>, vector<1x1x128xf32>
    %90 = vector.shape_cast %89 : vector<1x1x128xf32> to vector<1x128xf32>
    %91 = vector.extract_strided_slice %90 {offsets = [0, 0], sizes = [1, 56], strides = [1, 1]} : vector<1x128xf32> to vector<1x56xf32>
    %92 = vector.broadcast %91 : vector<1x56xf32> to vector<8x56xf32>
    %93 = arith.addf %88, %92 : vector<8x56xf32>
    %94 = vector.extract_strided_slice %93 {offsets = [0, 0], sizes = [8, 48], strides = [1, 1]} : vector<8x56xf32> to vector<8x48xf32>
    %95 = vector.extract_strided_slice %93 {offsets = [0, 48], sizes = [8, 8], strides = [1, 1]} : vector<8x56xf32> to vector<8x8xf32>
    %96 = tpu.transpose %95, [1, 0] : vector<8x8xf32> -> vector<8x8xf32>
    %c192 = arith.constant 192 : index
    %c0_42 = arith.constant 0 : index
    %97 = vector.load %arg5[%c192, %c0_42] : memref<608x128xbf16, #tpu.memory_space<vmem>>, vector<48x8xbf16>
    %cst_43 = arith.constant dense<0.000000e+00> : vector<8x8xf32>
    %98 = tpu.matmul %86, %97, %cst_43 {dimension_numbers = #tpu.dot_dimension_numbers<[1], [0], [0], [1], [0, 0, 1, 1], [], []>} : vector<8x48xbf16>, vector<48x8xbf16>, vector<8x8xf32> -> vector<8x8xf32>
    %c4 = arith.constant 4 : index
    %c0_44 = arith.constant 0 : index
    %c0_45 = arith.constant 0 : index
    %99 = vector.load %arg6[%c4, %c0_44, %c0_45] : memref<14x1x128xf32, #tpu.memory_space<vmem>>, vector<1x1x128xf32>
    %100 = vector.shape_cast %99 : vector<1x1x128xf32> to vector<1x128xf32>
    %101 = vector.extract_strided_slice %100 {offsets = [0, 0], sizes = [1, 8], strides = [1, 1]} : vector<1x128xf32> to vector<1x8xf32>
    %102 = vector.broadcast %101 : vector<1x8xf32> to vector<8x8xf32>
    %103 = arith.addf %98, %102 : vector<8x8xf32>
    %104 = tpu.transpose %103, [1, 0] : vector<8x8xf32> -> vector<8x8xf32>
    %105 = vector.shape_cast %104 : vector<8x8xf32> to vector<8x8x1xf32>
    %106 = vector.shape_cast %96 : vector<8x8xf32> to vector<8x1x8xf32>
    %107 = vector.broadcast %105 : vector<8x8x1xf32> to vector<8x8x8xf32>
    %108 = vector.broadcast %106 : vector<8x1x8xf32> to vector<8x8x8xf32>
    %109 = arith.addf %107, %108 : vector<8x8x8xf32>
    %110 = math.tanh %109 : vector<8x8x8xf32>
    %111 = math.exp %110 : vector<8x8x8xf32>
    %cst_46 = arith.constant dense<0.000000e+00> : vector<8x8xf32>
    %112 = vector.multi_reduction <add>, %111, %cst_46 [2] : vector<8x8x8xf32> to vector<8x8xf32>
    %113 = vector.shape_cast %112 : vector<8x8xf32> to vector<8x8x1xf32>
    %114 = tpu.reciprocal %113 {approx = true} : vector<8x8x1xf32> -> vector<8x8x1xf32>
    %115 = vector.broadcast %114 : vector<8x8x1xf32> to vector<8x8x8xf32>
    %116 = arith.mulf %111, %115 : vector<8x8x8xf32>
    %117 = vector.shape_cast %116 : vector<8x8x8xf32> to vector<64x8xf32>
    %118 = arith.truncf %117 : vector<64x8xf32> to vector<64x8xbf16>
    %119 = arith.truncf %94 : vector<8x48xf32> to vector<8x48xbf16>
    %cst_47 = arith.constant dense<0.000000e+00> : vector<64x48xf32>
    %120 = tpu.matmul %118, %119, %cst_47 {dimension_numbers = #tpu.dot_dimension_numbers<[1], [0], [0], [1], [0, 0, 1, 1], [], []>} : vector<64x8xbf16>, vector<8x48xbf16>, vector<64x48xf32> -> vector<64x48xf32>
    %121 = vector.shape_cast %120 : vector<64x48xf32> to vector<8x8x48xf32>
    %122 = tpu.iota {dimensions = array<i32: 0>} : vector<8x8x48xi32>
    %123 = tpu.iota {dimensions = array<i32: 2>} : vector<8x8x48xi32>
    %c6_i32_48 = arith.constant 6 : i32
    %124 = vector.broadcast %c6_i32_48 : i32 to vector<8x8x48xi32>
    %125 = arith.muli %122, %124 : vector<8x8x48xi32>
    %126 = arith.cmpi sge, %123, %125 : vector<8x8x48xi32>
    %c1_i32_49 = arith.constant 1 : i32
    %127 = vector.broadcast %c1_i32_49 : i32 to vector<8x8x48xi32>
    %128 = arith.addi %122, %127 : vector<8x8x48xi32>
    %c6_i32_50 = arith.constant 6 : i32
    %129 = vector.broadcast %c6_i32_50 : i32 to vector<8x8x48xi32>
    %130 = arith.muli %128, %129 : vector<8x8x48xi32>
    %131 = arith.cmpi slt, %123, %130 : vector<8x8x48xi32>
    %132 = arith.andi %126, %131 : vector<8x8x48xi1>
    %cst_51 = arith.constant 0.000000e+00 : f32
    %133 = vector.broadcast %cst_51 : f32 to vector<8x8x48xf32>
    %134 = arith.select %132, %121, %133 : vector<8x8x48xi1>, vector<8x8x48xf32>
    %cst_52 = arith.constant dense<0.000000e+00> : vector<8x48xf32>
    %135 = vector.multi_reduction <add>, %134, %cst_52 [0] : vector<8x8x48xf32> to vector<8x48xf32>
    %136 = arith.truncf %135 : vector<8x48xf32> to vector<8x48xbf16>
    %c240 = arith.constant 240 : index
    %c0_53 = arith.constant 0 : index
    %137 = vector.load %arg5[%c240, %c0_53] : memref<608x128xbf16, #tpu.memory_space<vmem>>, vector<48x32xbf16>
    %cst_54 = arith.constant dense<0.000000e+00> : vector<8x32xf32>
    %138 = tpu.matmul %136, %137, %cst_54 {dimension_numbers = #tpu.dot_dimension_numbers<[1], [0], [0], [1], [0, 0, 1, 1], [], []>} : vector<8x48xbf16>, vector<48x32xbf16>, vector<8x32xf32> -> vector<8x32xf32>
    %c5 = arith.constant 5 : index
    %c0_55 = arith.constant 0 : index
    %c0_56 = arith.constant 0 : index
    %139 = vector.load %arg6[%c5, %c0_55, %c0_56] : memref<14x1x128xf32, #tpu.memory_space<vmem>>, vector<1x1x128xf32>
    %140 = vector.shape_cast %139 : vector<1x1x128xf32> to vector<1x128xf32>
    %141 = vector.extract_strided_slice %140 {offsets = [0, 0], sizes = [1, 32], strides = [1, 1]} : vector<1x128xf32> to vector<1x32xf32>
    %142 = vector.broadcast %141 : vector<1x32xf32> to vector<8x32xf32>
    %143 = arith.addf %138, %142 : vector<8x32xf32>
    %144 = arith.truncf %143 : vector<8x32xf32> to vector<8x32xbf16>
    %c352 = arith.constant 352 : index
    %c0_57 = arith.constant 0 : index
    %145 = vector.load %arg5[%c352, %c0_57] : memref<608x128xbf16, #tpu.memory_space<vmem>>, vector<32x32xbf16>
    %cst_58 = arith.constant dense<0.000000e+00> : vector<8x32xf32>
    %146 = tpu.matmul %144, %145, %cst_58 {dimension_numbers = #tpu.dot_dimension_numbers<[1], [0], [0], [1], [0, 0, 1, 1], [], []>} : vector<8x32xbf16>, vector<32x32xbf16>, vector<8x32xf32> -> vector<8x32xf32>
    %c8 = arith.constant 8 : index
    %c0_59 = arith.constant 0 : index
    %c0_60 = arith.constant 0 : index
    %147 = vector.load %arg6[%c8, %c0_59, %c0_60] : memref<14x1x128xf32, #tpu.memory_space<vmem>>, vector<1x1x128xf32>
    %148 = vector.shape_cast %147 : vector<1x1x128xf32> to vector<1x128xf32>
    %149 = vector.extract_strided_slice %148 {offsets = [0, 0], sizes = [1, 32], strides = [1, 1]} : vector<1x128xf32> to vector<1x32xf32>
    %150 = vector.broadcast %149 : vector<1x32xf32> to vector<8x32xf32>
    %151 = arith.addf %146, %150 : vector<8x32xf32>
    %cst_61 = arith.constant 0.000000e+00 : f32
    %152 = vector.broadcast %cst_61 : f32 to vector<8x32xf32>
    %153 = arith.maximumf %151, %152 : vector<8x32xf32>
    %154 = arith.truncf %153 : vector<8x32xf32> to vector<8x32xbf16>
    %c384 = arith.constant 384 : index
    %c0_62 = arith.constant 0 : index
    %155 = vector.load %arg5[%c384, %c0_62] : memref<608x128xbf16, #tpu.memory_space<vmem>>, vector<32x32xbf16>
    %cst_63 = arith.constant dense<0.000000e+00> : vector<8x32xf32>
    %156 = tpu.matmul %154, %155, %cst_63 {dimension_numbers = #tpu.dot_dimension_numbers<[1], [0], [0], [1], [0, 0, 1, 1], [], []>} : vector<8x32xbf16>, vector<32x32xbf16>, vector<8x32xf32> -> vector<8x32xf32>
    %c9 = arith.constant 9 : index
    %c0_64 = arith.constant 0 : index
    %c0_65 = arith.constant 0 : index
    %157 = vector.load %arg6[%c9, %c0_64, %c0_65] : memref<14x1x128xf32, #tpu.memory_space<vmem>>, vector<1x1x128xf32>
    %158 = vector.shape_cast %157 : vector<1x1x128xf32> to vector<1x128xf32>
    %159 = vector.extract_strided_slice %158 {offsets = [0, 0], sizes = [1, 32], strides = [1, 1]} : vector<1x128xf32> to vector<1x32xf32>
    %160 = vector.broadcast %159 : vector<1x32xf32> to vector<8x32xf32>
    %161 = arith.addf %156, %160 : vector<8x32xf32>
    %162 = arith.truncf %84 : vector<8x32xf32> to vector<8x32xbf16>
    %163 = arith.truncf %161 : vector<8x32xf32> to vector<8x32xbf16>
    %c416 = arith.constant 416 : index
    %c0_66 = arith.constant 0 : index
    %164 = vector.load %arg5[%c416, %c0_66] : memref<608x128xbf16, #tpu.memory_space<vmem>>, vector<32x40xbf16>
    %cst_67 = arith.constant dense<0.000000e+00> : vector<8x40xf32>
    %165 = tpu.matmul %162, %164, %cst_67 {dimension_numbers = #tpu.dot_dimension_numbers<[1], [0], [0], [1], [0, 0, 1, 1], [], []>} : vector<8x32xbf16>, vector<32x40xbf16>, vector<8x40xf32> -> vector<8x40xf32>
    %c10 = arith.constant 10 : index
    %c0_68 = arith.constant 0 : index
    %c0_69 = arith.constant 0 : index
    %166 = vector.load %arg6[%c10, %c0_68, %c0_69] : memref<14x1x128xf32, #tpu.memory_space<vmem>>, vector<1x1x128xf32>
    %167 = vector.shape_cast %166 : vector<1x1x128xf32> to vector<1x128xf32>
    %168 = vector.extract_strided_slice %167 {offsets = [0, 0], sizes = [1, 40], strides = [1, 1]} : vector<1x128xf32> to vector<1x40xf32>
    %169 = vector.broadcast %168 : vector<1x40xf32> to vector<8x40xf32>
    %170 = arith.addf %165, %169 : vector<8x40xf32>
    %171 = vector.extract_strided_slice %170 {offsets = [0, 0], sizes = [8, 32], strides = [1, 1]} : vector<8x40xf32> to vector<8x32xf32>
    %172 = vector.extract_strided_slice %170 {offsets = [0, 32], sizes = [8, 8], strides = [1, 1]} : vector<8x40xf32> to vector<8x8xf32>
    %173 = tpu.transpose %172, [1, 0] : vector<8x8xf32> -> vector<8x8xf32>
    %c448 = arith.constant 448 : index
    %c0_70 = arith.constant 0 : index
    %174 = vector.load %arg5[%c448, %c0_70] : memref<608x128xbf16, #tpu.memory_space<vmem>>, vector<32x8xbf16>
    %cst_71 = arith.constant dense<0.000000e+00> : vector<8x8xf32>
    %175 = tpu.matmul %163, %174, %cst_71 {dimension_numbers = #tpu.dot_dimension_numbers<[1], [0], [0], [1], [0, 0, 1, 1], [], []>} : vector<8x32xbf16>, vector<32x8xbf16>, vector<8x8xf32> -> vector<8x8xf32>
    %c11 = arith.constant 11 : index
    %c0_72 = arith.constant 0 : index
    %c0_73 = arith.constant 0 : index
    %176 = vector.load %arg6[%c11, %c0_72, %c0_73] : memref<14x1x128xf32, #tpu.memory_space<vmem>>, vector<1x1x128xf32>
    %177 = vector.shape_cast %176 : vector<1x1x128xf32> to vector<1x128xf32>
    %178 = vector.extract_strided_slice %177 {offsets = [0, 0], sizes = [1, 8], strides = [1, 1]} : vector<1x128xf32> to vector<1x8xf32>
    %179 = vector.broadcast %178 : vector<1x8xf32> to vector<8x8xf32>
    %180 = arith.addf %175, %179 : vector<8x8xf32>
    %181 = tpu.transpose %180, [1, 0] : vector<8x8xf32> -> vector<8x8xf32>
    %182 = vector.shape_cast %181 : vector<8x8xf32> to vector<8x8x1xf32>
    %183 = vector.shape_cast %173 : vector<8x8xf32> to vector<8x1x8xf32>
    %184 = vector.broadcast %182 : vector<8x8x1xf32> to vector<8x8x8xf32>
    %185 = vector.broadcast %183 : vector<8x1x8xf32> to vector<8x8x8xf32>
    %186 = arith.addf %184, %185 : vector<8x8x8xf32>
    %187 = math.tanh %186 : vector<8x8x8xf32>
    %188 = math.exp %187 : vector<8x8x8xf32>
    %cst_74 = arith.constant dense<0.000000e+00> : vector<8x8xf32>
    %189 = vector.multi_reduction <add>, %188, %cst_74 [2] : vector<8x8x8xf32> to vector<8x8xf32>
    %190 = vector.shape_cast %189 : vector<8x8xf32> to vector<8x8x1xf32>
    %191 = tpu.reciprocal %190 {approx = true} : vector<8x8x1xf32> -> vector<8x8x1xf32>
    %192 = vector.broadcast %191 : vector<8x8x1xf32> to vector<8x8x8xf32>
    %193 = arith.mulf %188, %192 : vector<8x8x8xf32>
    %194 = vector.shape_cast %193 : vector<8x8x8xf32> to vector<64x8xf32>
    %195 = arith.truncf %194 : vector<64x8xf32> to vector<64x8xbf16>
    %196 = arith.truncf %171 : vector<8x32xf32> to vector<8x32xbf16>
    %cst_75 = arith.constant dense<0.000000e+00> : vector<64x32xf32>
    %197 = tpu.matmul %195, %196, %cst_75 {dimension_numbers = #tpu.dot_dimension_numbers<[1], [0], [0], [1], [0, 0, 1, 1], [], []>} : vector<64x8xbf16>, vector<8x32xbf16>, vector<64x32xf32> -> vector<64x32xf32>
    %198 = vector.shape_cast %197 : vector<64x32xf32> to vector<8x8x32xf32>
    %199 = tpu.iota {dimensions = array<i32: 0>} : vector<8x8x32xi32>
    %200 = tpu.iota {dimensions = array<i32: 2>} : vector<8x8x32xi32>
    %c4_i32 = arith.constant 4 : i32
    %201 = vector.broadcast %c4_i32 : i32 to vector<8x8x32xi32>
    %202 = arith.muli %199, %201 : vector<8x8x32xi32>
    %203 = arith.cmpi sge, %200, %202 : vector<8x8x32xi32>
    %c1_i32_76 = arith.constant 1 : i32
    %204 = vector.broadcast %c1_i32_76 : i32 to vector<8x8x32xi32>
    %205 = arith.addi %199, %204 : vector<8x8x32xi32>
    %c4_i32_77 = arith.constant 4 : i32
    %206 = vector.broadcast %c4_i32_77 : i32 to vector<8x8x32xi32>
    %207 = arith.muli %205, %206 : vector<8x8x32xi32>
    %208 = arith.cmpi slt, %200, %207 : vector<8x8x32xi32>
    %209 = arith.andi %203, %208 : vector<8x8x32xi1>
    %cst_78 = arith.constant 0.000000e+00 : f32
    %210 = vector.broadcast %cst_78 : f32 to vector<8x8x32xf32>
    %211 = arith.select %209, %198, %210 : vector<8x8x32xi1>, vector<8x8x32xf32>
    %cst_79 = arith.constant dense<0.000000e+00> : vector<8x32xf32>
    %212 = vector.multi_reduction <add>, %211, %cst_79 [0] : vector<8x8x32xf32> to vector<8x32xf32>
    %213 = arith.truncf %212 : vector<8x32xf32> to vector<8x32xbf16>
    %c480 = arith.constant 480 : index
    %c0_80 = arith.constant 0 : index
    %214 = vector.load %arg5[%c480, %c0_80] : memref<608x128xbf16, #tpu.memory_space<vmem>>, vector<32x32xbf16>
    %cst_81 = arith.constant dense<0.000000e+00> : vector<8x32xf32>
    %215 = tpu.matmul %213, %214, %cst_81 {dimension_numbers = #tpu.dot_dimension_numbers<[1], [0], [0], [1], [0, 0, 1, 1], [], []>} : vector<8x32xbf16>, vector<32x32xbf16>, vector<8x32xf32> -> vector<8x32xf32>
    %c12 = arith.constant 12 : index
    %c0_82 = arith.constant 0 : index
    %c0_83 = arith.constant 0 : index
    %216 = vector.load %arg6[%c12, %c0_82, %c0_83] : memref<14x1x128xf32, #tpu.memory_space<vmem>>, vector<1x1x128xf32>
    %217 = vector.shape_cast %216 : vector<1x1x128xf32> to vector<1x128xf32>
    %218 = vector.extract_strided_slice %217 {offsets = [0, 0], sizes = [1, 32], strides = [1, 1]} : vector<1x128xf32> to vector<1x32xf32>
    %219 = vector.broadcast %218 : vector<1x32xf32> to vector<8x32xf32>
    %220 = arith.addf %215, %219 : vector<8x32xf32>
    %cst_84 = arith.constant dense<0.000000e+00> : vector<32xf32>
    %221 = vector.multi_reduction <add>, %84, %cst_84 [0] : vector<8x32xf32> to vector<32xf32>
    %222 = vector.shape_cast %221 : vector<32xf32> to vector<1x32xf32>
    %223 = vector.broadcast %5 : vector<1x1xf32> to vector<1x32xf32>
    %224 = arith.divf %222, %223 : vector<1x32xf32>
    %225 = tpu.iota {dimensions = array<i32: 0>} : vector<8x32xi32>
    %c4_i32_85 = arith.constant 4 : i32
    %226 = vector.broadcast %c4_i32_85 : i32 to vector<8x32xi32>
    %227 = arith.cmpi slt, %225, %226 : vector<8x32xi32>
    %cst_86 = arith.constant 0.000000e+00 : f32
    %228 = vector.broadcast %cst_86 : f32 to vector<8x32xf32>
    %229 = arith.select %227, %161, %228 : vector<8x32xi1>, vector<8x32xf32>
    %cst_87 = arith.constant dense<0.000000e+00> : vector<32xf32>
    %230 = vector.multi_reduction <add>, %229, %cst_87 [0] : vector<8x32xf32> to vector<32xf32>
    %231 = vector.shape_cast %230 : vector<32xf32> to vector<1x32xf32>
    %232 = vector.broadcast %7 : vector<1x1xf32> to vector<1x32xf32>
    %233 = arith.divf %231, %232 : vector<1x32xf32>
    %234 = tpu.iota {dimensions = array<i32: 0>} : vector<8x32xi32>
    %c4_i32_88 = arith.constant 4 : i32
    %235 = vector.broadcast %c4_i32_88 : i32 to vector<8x32xi32>
    %236 = arith.cmpi slt, %234, %235 : vector<8x32xi32>
    %cst_89 = arith.constant 0.000000e+00 : f32
    %237 = vector.broadcast %cst_89 : f32 to vector<8x32xf32>
    %238 = arith.select %236, %220, %237 : vector<8x32xi1>, vector<8x32xf32>
    %cst_90 = arith.constant dense<0.000000e+00> : vector<32xf32>
    %239 = vector.multi_reduction <add>, %238, %cst_90 [0] : vector<8x32xf32> to vector<32xf32>
    %240 = vector.shape_cast %239 : vector<32xf32> to vector<1x32xf32>
    %241 = vector.broadcast %5 : vector<1x1xf32> to vector<1x32xf32>
    %242 = arith.divf %240, %241 : vector<1x32xf32>
    %243 = tpu.concatenate %224, %242, %233 in 1 : vector<1x32xf32>, vector<1x32xf32>, vector<1x32xf32> -> vector<1x96xf32>
    %244 = arith.truncf %243 : vector<1x96xf32> to vector<1x96xbf16>
    %c512 = arith.constant 512 : index
    %c0_91 = arith.constant 0 : index
    %245 = vector.load %arg5[%c512, %c0_91] : memref<608x128xbf16, #tpu.memory_space<vmem>>, vector<96x128xbf16>
    %cst_92 = arith.constant dense<0.000000e+00> : vector<1x128xf32>
    %246 = tpu.matmul %244, %245, %cst_92 {dimension_numbers = #tpu.dot_dimension_numbers<[1], [0], [0], [1], [0, 0, 1, 1], [], []>} : vector<1x96xbf16>, vector<96x128xbf16>, vector<1x128xf32> -> vector<1x128xf32>
    %c13 = arith.constant 13 : index
    %c0_93 = arith.constant 0 : index
    %c0_94 = arith.constant 0 : index
    %247 = vector.load %arg6[%c13, %c0_93, %c0_94] : memref<14x1x128xf32, #tpu.memory_space<vmem>>, vector<1x1x128xf32>
    %248 = vector.shape_cast %247 : vector<1x1x128xf32> to vector<1x128xf32>
    %249 = arith.addf %246, %248 : vector<1x128xf32>
    %c0_95 = arith.constant 0 : index
    %c0_96 = arith.constant 0 : index
    %c0_97 = arith.constant 0 : index
    %250 = vector.load %arg7[%c0_95, %c0_96, %c0_97] : memref<1x1x128xf32, #tpu.memory_space<vmem>>, vector<1x1x128xf32>
    %251 = vector.shape_cast %250 : vector<1x1x128xf32> to vector<1x128xf32>
    %252 = vector.shape_cast %249 : vector<1x128xf32> to vector<1x1x128xf32>
    tpu.vector_store %arg7[%c0_95, %c0_96, %c0_97], %252 {strides = array<i32>} : memref<1x1x128xf32, #tpu.memory_space<vmem>>, vector<1x1x128xf32>,
    return
  }
  func.func @transform_0(%arg0: i32) -> (i32, i32, i32) {
    %c0_i32 = arith.constant 0 : i32
    %c0_i32_0 = arith.constant 0 : i32
    %c0_i32_1 = arith.constant 0 : i32
    return %arg0, %c0_i32, %c0_i32_0 : i32, i32, i32
  }
  func.func @transform_1(%arg0: i32) -> (i32, i32, i32) {
    %c0_i32 = arith.constant 0 : i32
    %c0_i32_0 = arith.constant 0 : i32
    %c0_i32_1 = arith.constant 0 : i32
    return %arg0, %c0_i32, %c0_i32_0 : i32, i32, i32
  }
  func.func @transform_2(%arg0: i32) -> (i32, i32, i32) {
    %c0_i32 = arith.constant 0 : i32
    %c0_i32_0 = arith.constant 0 : i32
    %c0_i32_1 = arith.constant 0 : i32
    return %arg0, %c0_i32, %c0_i32_0 : i32, i32, i32
  }
  func.func @transform_3(%arg0: i32) -> (i32, i32, i32) {
    %c0_i32 = arith.constant 0 : i32
    %c0_i32_0 = arith.constant 0 : i32
    %c0_i32_1 = arith.constant 0 : i32
    return %arg0, %c0_i32, %c0_i32_0 : i32, i32, i32
  }
  func.func @transform_4(%arg0: i32) -> (i32, i32) {
    %c0_i32 = arith.constant 0 : i32
    %c0_i32_0 = arith.constant 0 : i32
    %c0_i32_1 = arith.constant 0 : i32
    return %c0_i32, %c0_i32_0 : i32, i32
  }
  func.func @transform_5(%arg0: i32) -> (i32, i32, i32) {
    %c0_i32 = arith.constant 0 : i32
    %c0_i32_0 = arith.constant 0 : i32
    %c0_i32_1 = arith.constant 0 : i32
    %c0_i32_2 = arith.constant 0 : i32
    return %c0_i32, %c0_i32_0, %c0_i32_1 : i32, i32, i32
  }
  func.func @transform_6(%arg0: i32) -> (i32, i32, i32) {
    %c0_i32 = arith.constant 0 : i32
    %c0_i32_0 = arith.constant 0 : i32
    %c0_i32_1 = arith.constant 0 : i32
    return %arg0, %c0_i32, %c0_i32_0 : i32, i32, i32
  }
}

</mosaic_0001>

<bundles_post_ra>
// kernel: tpu_custom_call.1
= control target key start
LH: loop header
LB: loop body
LE: loop exit
PB: predicated region body
PF: predicated region fallthrough
CT: control target
= control target key end

     0   :  { %s4264_s0 = inlined_call_operand.hbm [shape: f32[2,8,48], index: 0, kind: input, shape index: {}]   ;;  %s4265_s1 = inlined_call_operand.hbm [shape: f32[2,8,48], index: 1, kind: input, shape index: {}]   ;;  %s4266_s2 = inlined_call_operand.vmem [shape: f32[2,1,1], index: 2, kind: input, shape index: {}]   ;;  %s4267_s3 = inlined_call_operand.vmem [shape: f32[2,1,1], index: 3, kind: input, shape index: {}]   ;;  %s4268_s4 = inlined_call_operand.hbm [shape: bf16[608,128], index: 4, kind: input, shape index: {}]   ;;  %s4269_s5 = inlined_call_operand.vmem [shape: f32[14,1,128], index: 5, kind: input, shape index: {}]   ;;  %s4270_s6 = inlined_call_operand.hbm [shape: f32[2,1,128], index: 6, kind: output, shape index: {}]  }
   0x1   :  { %4282 = sst [smem:[#allocation15_spill]] %s4268_s4 }
   0x2   :  { %11 = vsyncpa [#allocation3], 0 }
   0x3   :  { %13 = vsyncpa [#allocation3 + $0x1], 0 }
   0x4   :  { %14 = vsyncpa [#allocation6], 0 }
   0x5   :  { %16 = vsyncpa [#allocation6 + $0x1], 0 }
   0x6   :  { %17 = vsyncpa [#allocation4], 0 }
   0x7   :  { %19 = vsyncpa [#allocation4 + $0x1], 0  ;;  %s3601_s21 = smov 0   ;;  %s3603_s22 = smov 0  }
   0x8   :  { %s3605_s23 = smov 0   ;;  %s3607_s24 = smov 0  }
   0x9 LB: > { %4283 = sst [smem:[#allocation13_spill]] %s3546_s23  ;;  %s3622_s25 = sadd.s32 4294967295, %s3550_s24   ;;  %s3550_s24 = sphi %s3607_s24, %s4350_s24   ;;  %s3546_s23 = sphi %s3605_s23, %s4347_s23   ;;  %s3542_s22 = sphi %s3603_s22, %s4349_s22   ;;  %s3538_s21 = sphi %s3601_s21, %s4348_s21  }
   0xa   : > { %s2791_s26 = sadd.s32 4294967294, %s3550_s24   ;;  %p45_p0 = scmp.ne.s32.totalorder %s3542_s22, %s3538_s21 }
   0xb   : > { %p4271_p1 = scmp.eq.s32.totalorder %s3622_s25, 0  ;;  %p195_p3 = scmp.eq.s32.totalorder %s2791_s26, 1 }
   0xc   : > { %p2792_p5 = scmp.ge.s32.totalorder %s3550_s24, 1  ;;  %p202_p7 = scmp.lt.s32.totalorder %s3550_s24, 3 }
   0xd   : > { %p3631_p4 = por %p4271_p1, %p45_p0  ;;  %p3636_p6 = por %p195_p3, %p45_p0 }
   0xe   : > { %p3641_p8 = pnand %p2792_p5, %p202_p7  ;;  %s3552_s30 = smov [#allocation7]  }
   0xf   : > { %s4284_s27 = scalar_select %p3631_p4, 1, 0 }
  0x10   : > { %s4285_s28 = scalar_select %p3636_p6, 1, 0 }
  0x11   : > { %s4286_s29 = scalar_select %p3641_p8, 1, 0 }
  0x12   : > { %s214_s7 = sshll.u32 %s3552_s30, 4  ;;  %p3138_p9 = pneg %p3641_p8  ;;  %s3645_s7 = int_to_ptr.vmem [resolvable:$true] %s214_s7 }
  0x13   : > { %s3657_s9 = sadd.s32 1, %s3550_s24   ;;  %s32_s10 = sadd.s32 1, %s3546_s23 }
  0x14   : > { %p3652_p11 = pnand %p3138_p9, %p4271_p1  ;;  %s29_s11 = ssub.s32 %s3550_s24, %s3657_s9 }
  0x15   : > { %s4288_s4 = sld [smem:[#allocation15_spill]] }
  0x16   : > { %p3390_p13 = pneg %p3652_p11 }
  0x1b   : > { %s3388_s14 = scalar_lea.hbm %s4288_s4, 4864 }
  0x1c   : > { %p3389_p12 = scmp.ne.s32.totalorder %s4288_s4, %s3388_s14  ;;  %p3395_p5 = scmp.lt.u32.totalorder %s3388_s14, %s4288_s4 }
  0x1e   : > { %p3391_p0 = pnand %p3390_p13, %p3389_p12 }
  0x20   : > { %p3392_p3 = pneg %p3391_p0 }
  0x22   : > { %p3397_p7 = pnand %p3395_p5, %p3392_p3 }
  0x24   : > { %3400 = shalt.err (!%p3397_p7)
}
  0x25   : > { %s3401_s19 = scalar_lea.vmem %s3645_s7, 4864  ;;  %p3409_p2 = scmp.lt.s32.totalorder %s3645_s7, %s3645_s7 }
  0x26   : > { %p3402_p9 = scmp.ne.s32.totalorder %s3645_s7, %s3401_s19  ;;  %p3410_p6 = scmp.lt.s32.totalorder %s3401_s19, %s3401_s19 }
  0x28   : > { %p3404_p10 = pnand %p3402_p9, %p3390_p13  ;;  %p3411_p4 = por %p3410_p6, %p3409_p2 }
  0x2a   : > { %p3405_p1 = pneg %p3404_p10 }
  0x2c   : > { %p3412_p8 = pnand %p3411_p4, %p3405_p1 }
  0x2e   : > { %3415 = shalt.err (!%p3412_p8)
}
  0x2f   : > { %s3553_s20 = smov 64   ;;  %s3554_s26 = smov 4  }
  0x30   : > { %3141 = dma.hbm_to_vmem [thread:$0]  (!%p3652_p11), %s4288_s4, 4864, %s3645_s7, [#allocation6], %s3553_s20, %s3553_s20, %s3554_s26  }
  0x31   : > { %p30_p2 = scmp.eq.s32.totalorder %s29_s11, 0  ;;  %p39_p1 = scmp.ne.s32.totalorder %s3546_s23, %s3542_s22 }
  0x32   : > { %p40_p4 = scmp.eq.s32.totalorder %s3550_s24, 0  ;;  %p3154_p6 = scmp.lt.s32.totalorder %s3550_s24, 2 }
  0x33   : > { %s3688_s13 = scalar_select %p30_p2, %s3546_s23, %s32_s10  }
  0x34   : > { %p41_p8 = por %p40_p4, %p39_p1  ;;  %p4290_p10 = scmp.eq.s32.totalorder %s3622_s25, 1 }
  0x35   : > { %4289 = sst [smem:[#allocation14_spill]] %s3688_s13  ;;  %s231_s15 = sand.u32 1, %s3546_s23  }
  0x36   : > { %p3692_p12 = por %p4290_p10, %p39_p1  ;;  %s2796_s16 = sshll.u32 %s3550_s24, 7 }
  0x37   : > { %s3698_s17 = sshll.u32 %s231_s15, 3  ;;  %s3703_s7 = scalar_lea.hbm %s4264_s0, %s2796_s16 }
  0x38   : > { %s4291_s14 = scalar_select %p3692_p12, 1, 0 }
  0x39   : > { %s235_s10 = scalar_lea.vmem [#allocation2], %s3698_s17  ;;  %p3706_p11 = pnand %p3154_p6, %p41_p8 }
  0x3a   : > { %s242_s11 = sshll.u32 %s235_s10, 4  ;;  %s3715_s30 = scalar_lea.hbm %s4265_s1, %s2796_s16  ;;  %s3710_s11 = int_to_ptr.vmem [resolvable:$true] %s242_s11 }
  0x3b   : > { %s232_s12 = scalar_lea.sflag [#allocation3], %s231_s15  ;;  %s3416_s8 = scalar_lea.hbm %s3703_s7, 128 }
  0x3c   : > { %p3417_p13 = scmp.ne.s32.totalorder %s3703_s7, %s3416_s8  ;;  %p3418_p0 = pneg %p3706_p11 }
  0x3d   : > { %s3421_s4 = scalar_lea.hbm %s4264_s0, 256  ;;  %p3422_p7 = scmp.lt.u32.totalorder %s3703_s7, %s4264_s0 }
  0x3e   : > { %p3419_p3 = pnand %p3418_p0, %p3417_p13  ;;  %p3423_p9 = scmp.lt.u32.totalorder %s3421_s4, %s3416_s8 }
  0x3f   : > { %p3425_p1 = scmp.lt.u32.totalorder %s3416_s8, %s3703_s7 }
  0x40   : > { %p3420_p5 = pneg %p3419_p3  ;;  %p3424_p2 = por %p3423_p9, %p3422_p7 }
  0x42   : > { %p3426_p4 = por %p3425_p1, %p3424_p2 }
  0x44   : > { %p3427_p6 = pnand %p3426_p4, %p3420_p5 }
  0x46   : > { %3430 = shalt.err (!%p3427_p6)
}
  0x47   : > { %s3431_s15 = scalar_lea.vmem %s3710_s11, 128  ;;  %s3555_s16 = smov [#allocation2]  }
  0x48   : > { %p3432_p8 = scmp.ne.s32.totalorder %s3710_s11, %s3431_s15  ;;  %s3436_s20 = sshll.u32 %s3555_s16, 4  ;;  %s3437_s20 = int_to_ptr.vmem [resolvable:$false] %s3436_s20 }
  0x49   : > { %s3438_s23 = scalar_lea.vmem %s3437_s20, 256  ;;  %p3439_p3 = scmp.lt.s32.totalorder %s3710_s11, %s3437_s20 }
  0x4a   : > { %p3434_p10 = pnand %p3432_p8, %p3418_p0  ;;  %p3440_p7 = scmp.lt.s32.totalorder %s3438_s23, %s3431_s15 }
  0x4c   : > { %p3435_p13 = pneg %p3434_p10  ;;  %p3441_p9 = por %p3440_p7, %p3439_p3 }
  0x4e   : > { %p3442_p2 = pnand %p3441_p9, %p3435_p13 }
  0x50   : > { %3445 = shalt.err (!%p3442_p2)
}
  0x51   : > { %3145 = dma.hbm_to_vmem [thread:$0]  (!%p3706_p11), %s3703_s7, 128, %s3710_s11, %s232_s12  }
  0x52   : > { %s249_s4 = sand.u32 1, %s3550_s24   ;;  %s253_s13 = scalar_lea.vmem [#allocation5], %s3698_s17 }
  0x53   : > { %s260_s26 = sshll.u32 %s253_s13, 4  ;;  %s250_s8 = scalar_lea.sflag [#allocation6], %s249_s4  ;;  %s261_s26 = int_to_ptr.vmem [resolvable:$true] %s260_s26 }
  0x54   : > { %s3446_s18 = scalar_lea.hbm %s3715_s30, 128  ;;  %s3451_s16 = scalar_lea.hbm %s4265_s1, 256 }
  0x55   : > { %p3447_p5 = scmp.ne.s32.totalorder %s3715_s30, %s3446_s18  ;;  %p3452_p6 = scmp.lt.u32.totalorder %s3715_s30, %s4265_s1 }
  0x56   : > { %p3453_p8 = scmp.lt.u32.totalorder %s3451_s16, %s3446_s18  ;;  %p3455_p13 = scmp.lt.u32.totalorder %s3446_s18, %s3715_s30 }
  0x57   : > { %p3449_p1 = pnand %p3447_p5, %p3418_p0 }
  0x58   : > { %p3454_p10 = por %p3453_p8, %p3452_p6 }
  0x59   : > { %p3450_p4 = pneg %p3449_p1 }
  0x5a   : > { %p3456_p3 = por %p3455_p13, %p3454_p10 }
  0x5c   : > { %p3457_p7 = pnand %p3456_p3, %p3450_p4 }
  0x5e   : > { %3460 = shalt.err (!%p3457_p7)
}
  0x5f   : > { %s3461_s17 = scalar_lea.vmem %s261_s26, 128  ;;  %s3556_s7 = smov [#allocation5]  }
  0x60   : > { %p3462_p9 = scmp.ne.s32.totalorder %s261_s26, %s3461_s17  ;;  %s3466_s11 = sshll.u32 %s3556_s7, 4  ;;  %s3467_s11 = int_to_ptr.vmem [resolvable:$false] %s3466_s11 }
  0x61   : > { %s3468_s12 = scalar_lea.vmem %s3467_s11, 256  ;;  %p3469_p1 = scmp.lt.s32.totalorder %s261_s26, %s3467_s11 }
  0x62   : > { %p3464_p2 = pnand %p3462_p9, %p3418_p0  ;;  %p3470_p12 = scmp.lt.s32.totalorder %s3468_s12, %s3461_s17 }
  0x64   : > { %p3465_p5 = pneg %p3464_p2  ;;  %p3471_p6 = por %p3470_p12, %p3469_p1 }
  0x66   : > { %p3472_p8 = pnand %p3471_p6, %p3465_p5 }
  0x68   : > { %3475 = shalt.err (!%p3472_p8)
}
  0x69   : > { %3148 = dma.hbm_to_vmem [thread:$0]  (!%p3706_p11), %s3715_s30, 128, %s261_s26, %s250_s8  }
  0x6a   : > { %p4293_p4 = scmp.ne.s32.totalorder %s4286_s29, 0 }
  0x6b   : > { %s3766_s4 = sand.u32 (!%p4293_p4), 1, %s3542_s22   ;;  %p4294_p0 = scmp.ne.s32.totalorder (!%p4293_p4), %s4284_s27, 0 }
  0x6c   : > { %281 = sbr.rel (%p4293_p4) target bundleno = 4779 (0x12ab), region = 44  ;;  %s2800_s13 = sshll.u32 (!%p4293_p4), %s3766_s4, 3 }
  0x6d   : > { %s284_s18 = scalar_lea.sflag (!%p4293_p4), [#allocation3], %s3766_s4  ;;  %s287_s10 = scalar_lea.vmem (!%p4293_p4), [#allocation2], %s2800_s13 }
  0x73   : > { %3521 = dma.done.wait (%p4294_p0), %s284_s18, 128  }
  0x74   : > { %3523 = vsyncadd (%p4294_p0), %s284_s18, 4294967168  ;;  %s292_s19 = sand.u32 1, %s3622_s25   ;;  %s3775_s29 = scalar_lea.vmem [#allocation5], %s2800_s13 }
  0x75   : > { %s293_s30 = scalar_lea.sflag [#allocation6], %s292_s19 }
  0x76   : > { %3525 = dma.done.wait (%p4294_p0), %s293_s30, 128  }
  0x77   : > { %3527 = vsyncadd (%p4294_p0), %s293_s30, 4294967168  ;;  %p4295_p12 = scmp.eq.s32.totalorder %s3622_s25, 0 }
  0x79   : > { %3529 = dma.done.wait (%p4295_p12), [#allocation6], 4864   ;;  %p4296_p11 = pmov %p4295_p12 }
  0x7a   : > { %v3557_v0 = vmov 0.0   ;;  %vm3558_vm0 = vmmov 0   ;;  %v3202_v1 = vld [vmem:[#allocation7] sm:$0xff]   ;;  %v3203_v2 = vld [vmem:[#allocation7 + $0x8] sm:$0xff]   ;;  %v3204_v3 = vld [vmem:[#allocation7 + $0x10] sm:$0xff]   ;;  %vm382_vm1 = vcmask 392192   ;;  %v566_v23 = vlaneseq }
  0x7b   : > { %3531 = vsyncadd (%p4296_p11), [#allocation6], 4294962432  ;;  %2963 = vmatprep.subr.bf16.mxu1 %v3557_v0  ;;  %2969 = vmatprep.mubr.msk.bf16.mxu1 %vm3558_vm0, %v3557_v0  ;;  %v346_v4 = vld [vmem:[%s287_s10] sm:$0xff]  ;;  %v3205_v5 = vld [vmem:[#allocation7 + $0x18] sm:$0xff]   ;;  %vm4281_vm2 = vcmask 1043456   ;;  %s3559_s8 = smov 80  }
  0x7c   : > { %2964 = vmatpush3.bf16.msra.mxu1 %v3202_v1  ;;  %v3790_v6 = vpack.c.bf16 %v346_v4, %v346_v4  ;;  %v3206_v7 = vld [vmem:[#allocation7 + $0x20] sm:$0xff]   ;;  %v3207_v8 = vld [vmem:[#allocation7 + $0x28] sm:$0xff]   ;;  %v3815_v24 = vshrl.u32 %v566_v23, 7  ;;  %v3560_v49 = vmov 1966171168   ;;  %vm4280_vm3 = vcmask 64512  }
  0x7d   : > { %2965 = vmatprep.subr.bf16.mxu1 %v3557_v0  ;;  %v2803_v9 = vld [vmem:[%s4269_s5] ss:$0 sm:$0xff]  ;;  %v2809_v21 = vld [vmem:[%s4269_s5 + $0x1] ss:$0 sm:$0xff]  ;;  %v625_v50 = vunpack.c.l.s4 %v3560_v49  ;;  %s3561_s16 = smov 96   ;;  %p339_p10 = scmp.lt.s32.totalorder %s3622_s25, 1 }
  0x7e   : > { %v3818_v26 = vsub.s32 0, %v3815_v24  ;;  %v3822_v29 = vsub.s32 1, %v3815_v24  ;;  %v3826_v31 = vsub.s32 2, %v3815_v24  ;;  %v3830_v33 = vsub.s32 3, %v3815_v24  ;;  %s3563_s26 = smov 32   ;;  %s2893_s20 = sshll.u32 %s3622_s25, 4 }
  0x7f   : > { %v3834_v35 = vsub.s32 4, %v3815_v24  ;;  %v3838_v37 = vsub.s32 5, %v3815_v24  ;;  %v3842_v39 = vsub.s32 6, %v3815_v24  ;;  %v3846_v41 = vsub.s32 7, %v3815_v24  ;;  %s340_s11 = scalar_select %p339_p10, %s3622_s25, 1 }
  0x80   : > { %2966 = vmatpush3.bf16.msra.mxu1 %v3203_v2  ;;  %v626_v52 = vunpack.c.0.s8 %v625_v50  ;;  %s338_s23 = scalar_lea.vmem [#allocation8], %s3766_s4  ;;  %s4220_s12 = scalar_lea.hbm %s4270_s6, %s2893_s20 }
  0x81   : > { %2967 = vmatprep.subr.bf16.mxu1 %v3557_v0  ;;  %s344_s18 = scalar_lea.vmem %s4267_s3, %s340_s11  ;;  %s341_s30 = scalar_lea.vmem %s4266_s2, %s340_s11 }
  0x82   : > { %v3850_v54 = vsub.s32 %v626_v52, %v3815_v24  ;;  %s2675_s17 = sshll.u32 %s338_s23, 4  ;;  %s2663_s13 = scalar_lea.sflag [#allocation4], %s3766_s4  ;;  %s4222_s17 = int_to_ptr.vmem [resolvable:$true] %s2675_s17 }
  0x83   : > { %s3476_s25 = scalar_lea.vmem %s4222_s17, 16  ;;  %p4343_p3 = scmp.ne.s32.totalorder %s4291_s14, 0 }
  0x84   : > { %2968 = vmatpush3.bf16.msra.mxu1 %v3204_v3  ;;  %p3477_p13 = scmp.ne.s32.totalorder %s4222_s17, %s3476_s25 }
  0x85   : > { %2973 = vmatprep.subr.bf16.mxu1 %v3557_v0 }
  0x86   : > { %p3478_p7 = pnand %p3477_p13, %p4343_p3 }
  0x87   : > { %2970 = vmatmul.mubr.msk.bf16.vlgmr.msra.gmra.mrb[0].mxu1 %vm382_vm1, %v3790_v6 }
  0x88   : > { %2974 = vmatpush3.bf16.msra.mxu1 %v3205_v5  ;;  %2979 = vmatprep.mubr.msk.bf16.mxu1 %vm3558_vm0, %v3557_v0  ;;  %p3479_p9 = pneg %p3478_p7 }
  0x89   : > { %2975 = vmatprep.subr.bf16.mxu1 %v3557_v0 }
  0x8c   : > { %2976 = vmatpush3.bf16.msra.mxu1 %v3206_v7 }
  0x8d   : > { %2977 = vmatprep.subr.bf16.mxu1 %v3557_v0 }
  0x90   : > { %2978 = vmatpush3.bf16.msra.mxu1 %v3207_v8 }
  0x91   : > { %2993 = vmatprep.subr.bf16.mxu1 %v3557_v0 }
  0x93   : > { %2980 = vmatmul.mubr.msk.bf16.vlgmr.msra.gmra.mrb[4].mxu1 %vm382_vm1, %v3790_v6 }
  0x94   : > { %2999 = vmatprep.mubr.msk.bf16.mxu1 %vm3558_vm0, %v3557_v0 }
 0x15a   : > { %v420_v10 = vpop.f32.mrb[0].mxu1 }
 0x15b   : > { %v421_v11 = vadd.f32 %v2803_v9, %v420_v10  ;;  %v2971_v12 = vpop.f32.mrb[1].mxu1 }
 0x15c   : > { %v423_v13 = vpop.f32.mrb[2].mxu1 }
 0x15d   : > { %427 = vrot.lane.b32.xlu0 %v421_v11, %s3559_s8  ;;  %v2972_v14 = vpop.f32.mrb[3].mxu1  ;;  %v789_v15 = vpack.c.bf16 %v421_v11, %v421_v11 }
 0x15f   : > { %3125 = vmatprep.subr.msk.bf16.mxu0 %vm4281_vm2, %v789_v15  ;;  %v804_v16 = vsel %vm4281_vm2, %v789_v15, 0 }
 0x160   : > { %2984 = vmatpush3.bf16.msra.mxu0 %v804_v16 }
 0x161   : > { %3011 = vmatprep.subr.bf16.mxu0 %v3557_v0 }
 0x166   : > { %v528_v17 = vpop.f32.mrb[4].mxu1 }
 0x167   : > { %v2981_v18 = vpop.f32.mrb[5].mxu1  ;;  %v529_v22 = vadd.f32 %v2809_v21, %v528_v17 }
 0x168   : > { %v531_v19 = vpop.f32.mrb[6].mxu1 }
 0x169   : > { %v2982_v20 = vpop.f32.mrb[7].mxu1 }
 0x17b   : > { %534 = vxpose.xlu0.b32.start.end [1/1] (short) (narrow) %v529_v22, 8 }
 0x1cf   : > { %v428_v25 = vpop.permute.xlu0 %427 }
 0x1fb   : > { %v550_v27 = vpop.trf.xlu0 }
 0x1fc   : > { %v569_v28 = vrot.slane %v550_v27, %v3818_v26  ;;  %v576_v30 = vrot.slane %v550_v27, %v3822_v29  ;;  %v583_v32 = vrot.slane %v550_v27, %v3826_v31  ;;  %v590_v34 = vrot.slane %v550_v27, %v3830_v33 }
 0x1fd   : > { %v597_v36 = vrot.slane %v550_v27, %v3834_v35  ;;  %v604_v38 = vrot.slane %v550_v27, %v3838_v37  ;;  %v611_v40 = vrot.slane %v550_v27, %v3842_v39  ;;  %v618_v42 = vrot.slane %v550_v27, %v3846_v41 }
 0x1fe   : > { %571 = vbcast.lane.b32.xlu1 %v569_v28, 256 }
 0x202   : > { %578 = vbcast.lane.b32.xlu1 %v576_v30, 256 }
 0x206   : > { %585 = vbcast.lane.b32.xlu1 %v583_v32, 256 }
 0x20a   : > { %592 = vbcast.lane.b32.xlu1 %v590_v34, 256 }
 0x20e   : > { %599 = vbcast.lane.b32.xlu1 %v597_v36, 256 }
 0x212   : > { %606 = vbcast.lane.b32.xlu1 %v604_v38, 256 }
 0x216   : > { %613 = vbcast.lane.b32.xlu1 %v611_v40, 256 }
 0x21a   : > { %620 = vbcast.lane.b32.xlu1 %v618_v42, 256 }
 0x243   : > { %430 = vxpose.xlu1.b32.start.end [1/1] (short) (narrow) %v428_v25, 8 }
 0x270   : > { %v572_v43 = vpop.permute.xlu1 %571 }
 0x274   : > { %v579_v44 = vpop.permute.xlu1 %578 }
 0x278   : > { %v586_v45 = vpop.permute.xlu1 %585 }
 0x27c   : > { %v593_v46 = vpop.permute.xlu1 %592 }
 0x280   : > { %v600_v47 = vpop.permute.xlu1 %599 }
 0x284   : > { %v607_v48 = vpop.permute.xlu1 %606 }
 0x288   : > { %v614_v51 = vpop.permute.xlu1 %613 }
 0x28c   : > { %v621_v53 = vpop.permute.xlu1 %620 }
 0x2c3   : > { %v446_v55 = vpop.trf.xlu1 }
 0x2c4   : > { %v623_v56 = vcombine.high %v446_v55, %v446_v55  ;;  %v630_v57 = vrot.slane %v446_v55, %v3850_v54 }
 0x2c6   : > { %v637_v58 = vrot.slane %v623_v56, %v3850_v54  ;;  %v638_v59 = vcombine.high %v630_v57, %v630_v57  ;;  %v646_v60 = vrot.slane %v630_v57, %v3850_v54 }
 0x2c8   : > { %v639_v61 = vcombine.high %v637_v58, %v637_v58  ;;  %v653_v62 = vrot.slane %v637_v58, %v3850_v54  ;;  %v660_v63 = vrot.slane %v638_v59, %v3850_v54  ;;  %v668_v1 = vcombine.high %v646_v60, %v646_v60 }
 0x2c9   : > { %v675_v2 = vrot.slane %v646_v60, %v3818_v26 }
 0x2ca   : > { %v670_v3 = vcombine.high %v660_v63, %v660_v63  ;;  %v679_v4 = vrot.slane %v660_v63, %v3818_v26  ;;  %v667_v5 = vrot.slane %v639_v61, %v3850_v54  ;;  %v683_v7 = vrot.slane %v668_v1, %v3818_v26 }
 0x2cb   : > { %v691_v8 = vrot.slane %v653_v62, %v3818_v26  ;;  %v712_v9 = vadd.f32 %v675_v2, %v572_v43  ;;  %v669_v14 = vcombine.high %v653_v62, %v653_v62 }
 0x2cc   : > { %v687_v10 = vrot.slane %v670_v3, %v3818_v26  ;;  %v713_v11 = vadd.f32 %v679_v4, %v579_v44  ;;  %v714_v12 = vadd.f32 %v683_v7, %v586_v45  ;;  %v695_v15 = vrot.slane %v667_v5, %v3818_v26 }
 0x2cd   : > { %3240 = vtanh.f32 %v712_v9  ;;  %v716_v16 = vadd.f32 %v691_v8, %v600_v47  ;;  %v671_v17 = vcombine.high %v667_v5, %v667_v5  ;;  %v699_v18 = vrot.slane %v669_v14, %v3818_v26 }
 0x2ce   : > { %v715_v13 = vadd.f32 %v687_v10, %v593_v46  ;;  %3242 = vtanh.f32 %v713_v11  ;;  %v717_v19 = vadd.f32 %v695_v15, %v607_v48 }
 0x2cf   : > { %3244 = vtanh.f32 %v714_v12  ;;  %v703_v21 = vrot.slane %v671_v17, %v3818_v26  ;;  %v718_v22 = vadd.f32 %v699_v18, %v614_v51 }
 0x2d0   : > { %3246 = vtanh.f32 %v715_v13 }
 0x2d1   : > { %3248 = vtanh.f32 %v716_v16  ;;  %v719_v34 = vadd.f32 %v703_v21, %v621_v53 }
 0x2d2   : > { %3250 = vtanh.f32 %v717_v19 }
 0x2d7   : > { %v3241_v20 = vpop.eup %3240 }
 0x2d8   : > { %v728_v25 = vmul.f32 1.442695, %v3241_v20  ;;  %v3243_v27 = vpop.eup %3242 }
 0x2d9   : > { %v3245_v28 = vpop.eup %3244  ;;  %v730_v30 = vmul.f32 1.442695, %v3243_v27 }
 0x2da   : > { %3252 = vpow2.f32 %v728_v25  ;;  %v3247_v32 = vpop.eup %3246  ;;  %v732_v36 = vmul.f32 1.442695, %v3245_v28 }
 0x2db   : > { %3254 = vtanh.f32 %v718_v22  ;;  %v734_v38 = vmul.f32 1.442695, %v3247_v32  ;;  %v3249_v40 = vpop.eup %3248 }
 0x2dc   : > { %3256 = vpow2.f32 %v730_v30  ;;  %v736_v42 = vmul.f32 1.442695, %v3249_v40  ;;  %v3251_v43 = vpop.eup %3250 }
 0x2dd   : > { %3258 = vpow2.f32 %v732_v36  ;;  %v738_v45 = vmul.f32 1.442695, %v3251_v43  ;;  %v3209_v43 = vld [vmem:[#allocation7 + $0x38] sm:$0xff]  }
 0x2de   : > { %3260 = vtanh.f32 %v719_v34 }
 0x2df   : > { %3262 = vpow2.f32 %v734_v38 }
 0x2e0   : > { %3264 = vpow2.f32 %v736_v42  ;;  %v3208_v42 = vld [vmem:[#allocation7 + $0x30] sm:$0xff]  }
 0x2e1   : > { %3266 = vpow2.f32 %v738_v45  ;;  %2994 = vmatpush3.bf16.msra.mxu1 %v3208_v42  ;;  %v3884_v45 = vand.u32 127, %v566_v23 }
 0x2e2   : > { %2995 = vmatprep.subr.bf16.mxu1 %v3557_v0 }
 0x2e3   : > { %vm4277_vm4 = vcmp.ge.s32.totalorder %v3884_v45, 12  ;;  %vm883_vm5 = vcmp.lt.s32.totalorder %v3884_v45, 18  ;;  %vm874_vm6 = vcmp.ge.s32.totalorder %v3884_v45, 6  ;;  %vm4278_vm7 = vcmp.lt.s32.totalorder %v3884_v45, 12 }
 0x2e4   : > { %v3253_v44 = vpop.eup %3252  ;;  %vm4279_vm8 = vcmp.lt.s32.totalorder %v3884_v45, 6  ;;  %vm3893_vm9 = vmand %vm4277_vm4, %vm883_vm5  ;;  %vm876_vm10 = vcmp.ge.s32.totalorder %v3884_v45, 18  ;;  %vm4276_vm11 = vcmp.lt.s32.totalorder %v3884_v45, 24  ;;  %vm877_vm14 = vcmp.ge.s32.totalorder %v3884_v45, 24 }
 0x2e5   : > { %v3255_v46 = vpop.eup %3254  ;;  %v745_v47 = vsel %vm4280_vm3, %v3253_v44, 0.0  ;;  %2996 = vmatpush3.bf16.msra.mxu1 %v3209_v43  ;;  %vm3901_vm12 = vmand %vm874_vm6, %vm4278_vm7  ;;  %vm885_vm15 = vcmp.lt.s32.totalorder %v3884_v45, 30  ;;  %vm879_vm5 = vcmp.ge.s32.totalorder %v3884_v45, 36  ;;  %vm887_vm6 = vcmp.lt.s32.totalorder %v3884_v45, 42 }
 0x2e6   : > { %v3257_v48 = vpop.eup %3256  ;;  %746 = vadd.xlane.f32.xlu0 %v745_v47  ;;  %v740_v51 = vmul.f32 1.442695, %v3255_v46  ;;  %2997 = vmatprep.subr.bf16.mxu1 %v3557_v0  ;;  %vm3909_vm13 = vmand %vm876_vm10, %vm4276_vm11  ;;  %vm878_vm10 = vcmp.ge.s32.totalorder %v3884_v45, 30  ;;  %vm886_vm11 = vcmp.lt.s32.totalorder %v3884_v45, 36 }
 0x2e7   : > { %v3259_v49 = vpop.eup %3258  ;;  %v748_v50 = vsel %vm4280_vm3, %v3257_v48, 0.0  ;;  %vm3931_vm4 = vmand %vm877_vm14, %vm885_vm15 }
 0x2e8   : > { %749 = vadd.xlane.f32.xlu1 %v748_v50  ;;  %v3261_v52 = vpop.eup %3260  ;;  %v751_v53 = vsel %vm4280_vm3, %v3259_v49, 0.0  ;;  %3268 = vpow2.f32 %v740_v51  ;;  %vm3935_vm7 = vmand %vm879_vm5, %vm887_vm6  ;;  %vm4313_vm5 = vcmask 64512  }
 0x2e9   : > { %v3263_v55 = vpop.eup %3262  ;;  %v742_v56 = vmul.f32 1.442695, %v3261_v52  ;;  %vm3941_vm2 = vmand %vm878_vm10, %vm886_vm11 }
 0x2ea   : > { %752 = vadd.xlane.f32.xlu0 %v751_v53  ;;  %v754_v57 = vsel %vm4280_vm3, %v3263_v55, 0.0  ;;  %v3265_v58 = vpop.eup %3264  ;;  %vm4314_vm6 = vmmov %vm4313_vm5 }
 0x2eb   : > { %3270 = vpow2.f32 %v742_v56  ;;  %v757_v59 = vsel %vm4280_vm3, %v3265_v58, 0.0  ;;  %v3267_v60 = vpop.eup %3266  ;;  %vm4315_vm10 = vmmov %vm4313_vm5 }
 0x2ec   : > { %v760_v61 = vsel %vm4280_vm3, %v3267_v60, 0.0 }
 0x2ee   : > { %755 = vadd.xlane.f32.xlu0 %v754_v57 }
 0x2f2   : > { %758 = vadd.xlane.f32.xlu0 %v757_v59  ;;  %v3269_v62 = vpop.eup %3268 }
 0x2f3   : > { %v763_v63 = vsel %vm4280_vm3, %v3269_v62, 0.0 }
 0x2f5   : > { %v3271_v1 = vpop.eup %3270 }
 0x2f6   : > { %761 = vadd.xlane.f32.xlu0 %v760_v61  ;;  %v766_v2 = vsel %vm4280_vm3, %v3271_v1, 0.0 }
 0x2fa   : > { %764 = vadd.xlane.f32.xlu0 %v763_v63 }
 0x2fe   : > { %767 = vadd.xlane.f32.xlu0 %v766_v2 }
 0x373   : > { %v747_v3 = vpop.xlane.xlu0 %746 }
 0x374   : > { %3272 = vrcp.f32 %v747_v3  ;;  %v3225_v3 = vld [vmem:[#allocation7 + $0xb8] sm:$0xff]  }
 0x375   : > { %v750_v4 = vpop.xlane.xlu1 %749 }
 0x376   : > { %3274 = vrcp.f32 %v750_v4 }
 0x377   : > { %v753_v5 = vpop.xlane.xlu0 %752 }
 0x378   : > { %3276 = vrcp.f32 %v753_v5  ;;  %v3228_v5 = vld [vmem:[#allocation7 + $0xc0] sm:$0xff]  }
 0x37b   : > { %v756_v7 = vpop.xlane.xlu0 %755 }
 0x37c   : > { %3278 = vrcp.f32 %v756_v7 }
 0x37e   : > { %v3273_v8 = vpop.eup %3272 }
 0x37f   : > { %v759_v9 = vpop.xlane.xlu0 %758  ;;  %v777_v11 = vmul.f32 %v3273_v8, %v3253_v44  ;;  %v3210_v44 = vld [vmem:[#allocation7 + $0x40] sm:$0xff]  }
 0x380   : > { %v3275_v10 = vpop.eup %3274  ;;  %3280 = vrcp.f32 %v759_v9  ;;  %2998 = vmatpush3.bf16.msra.mxu1 %v3210_v44  ;;  %v3218_v44 = vld [vmem:[#allocation7 + $0x48] sm:$0xff]  }
 0x381   : > { %v778_v12 = vmul.f32 %v3275_v10, %v3257_v48  ;;  %3003 = vmatprep.subr.bf16.mxu1 %v3557_v0  ;;  %v3229_v10 = vld [vmem:[#allocation7 + $0xc8] sm:$0xff]  }
 0x382   : > { %v3277_v15 = vpop.eup %3276 }
 0x383   : > { %v762_v13 = vpop.xlane.xlu0 %761  ;;  %v785_v14 = vpack.c.bf16 %v778_v12, %v777_v11  ;;  %v779_v18 = vmul.f32 %v3277_v15, %v3259_v49 }
 0x384   : > { %3282 = vrcp.f32 %v762_v13 }
 0x385   : > { %2985 = vmatprep.mubr.msk.bf16.mxu0 %vm4280_vm3, %v785_v14 }
 0x386   : > { %v3279_v16 = vpop.eup %3278 }
 0x387   : > { %v765_v17 = vpop.xlane.xlu0 %764  ;;  %v780_v19 = vmul.f32 %v3279_v16, %v3263_v55 }
 0x388   : > { %3284 = vrcp.f32 %v765_v17 }
 0x389   : > { %v786_v20 = vpack.c.bf16 %v780_v19, %v779_v18 }
 0x38a   : > { %v3281_v22 = vpop.eup %3280 }
 0x38b   : > { %2986 = vmatmul.mubr.msk.bf16.vlgmr.msra.gmra.mrb[0].mxu0 %vm4280_vm3, %v786_v20  ;;  %v768_v21 = vpop.xlane.xlu0 %767  ;;  %v781_v27 = vmul.f32 %v3281_v22, %v3265_v58  ;;  %v3211_v22 = vld [vmem:[#allocation7 + $0x90] sm:$0xff]  }
 0x38c   : > { %3286 = vrcp.f32 %v768_v21 }
 0x38e   : > { %v3283_v25 = vpop.eup %3282 }
 0x38f   : > { %v782_v28 = vmul.f32 %v3283_v25, %v3267_v60 }
 0x391   : > { %v787_v30 = vpack.c.bf16 %v782_v28, %v781_v27  ;;  %v3212_v27 = vld [vmem:[#allocation7 + $0x98] sm:$0xff]   ;;  %v3213_v28 = vld [vmem:[#allocation7 + $0xa0] sm:$0xff]  }
 0x392   : > { %v3285_v32 = vpop.eup %3284  ;;  %3012 = vmatpush3.bf16.msra.mxu0 %v3213_v28 }
 0x393   : > { %2989 = vmatprep.mubr.msk.bf16.mxu0 %vm4280_vm3, %v787_v30  ;;  %v783_v36 = vmul.f32 %v3285_v32, %v3269_v62  ;;  %v3214_v30 = vld [vmem:[#allocation7 + $0xa8] sm:$0xff]   ;;  %3013 = vmatprep.subr.bf16.mxu0 %v3557_v0  ;;  %v2819_v32 = vld [vmem:[%s4269_s5 + $0x2] ss:$0 sm:$0xff] }
 0x396   : > { %v3287_v34 = vpop.eup %3286  ;;  %3014 = vmatpush3.bf16.msra.mxu0 %v3214_v30 }
 0x397   : > { %v784_v38 = vmul.f32 %v3287_v34, %v3271_v1  ;;  %3029 = vmatprep.subr.bf16.mxu0 %v3557_v0 }
 0x399   : > { %v788_v40 = vpack.c.bf16 %v784_v38, %v783_v36 }
 0x39b   : > { %2990 = vmatmul.mubr.msk.bf16.gmra.mrb[4].mxu0 %vm4280_vm3, %v788_v40  ;;  %vm888_vm3 = vcmp.lt.s32.totalorder %v3884_v45, 48 }
 0x39c   : > { %3015 = vmatprep.mubr.msk.bf16.mxu0 %vm3558_vm0, %v3557_v0 }
 0x45e   : > { %v2987_v46 = vpop.f32.mrb[0].mxu0 }
 0x45f   : > { %v840_v23 = vpop.f32.mrb[1].mxu0  ;;  %v899_v53 = vsel %vm3893_vm9, %v2987_v46, 0.0  ;;  %v3219_v46 = vld [vmem:[#allocation7 + $0x50] sm:$0xff]  }
 0x460   : > { %v897_v49 = vsel %vm4279_vm8, %v840_v23, 0.0  ;;  %v2988_v50 = vpop.f32.mrb[2].mxu0  ;;  %v908_v60 = vsel %vm382_vm1, %v899_v53, 0.0  ;;  %vm880_vm8 = vcmp.ge.s32.totalorder %v3884_v45, 42  ;;  %v3220_v23 = vld [vmem:[#allocation7 + $0x58] sm:$0xff]  }
 0x461   : > { %v843_v52 = vpop.f32.mrb[3].mxu0  ;;  %v905_v56 = vsel %vm382_vm1, %v897_v49, 0.0  ;;  %v900_v58 = vsel %vm3909_vm13, %v2988_v50, 0.0  ;;  %vm3948_vm15 = vmand %vm880_vm8, %vm888_vm3  ;;  %vm1021_vm3 = vcmask 261120   ;;  %v2825_v49 = vld [vmem:[%s4269_s5 + $0x6] ss:$0 sm:$0xff] }
 0x462   : > { %v898_v55 = vsel %vm3901_vm12, %v843_v52, 0.0  ;;  %v910_v62 = vsel %vm382_vm1, %v900_v58, 0.0  ;;  %v3215_v58 = vld [vmem:[#allocation7 + $0x60] sm:$0xff]   ;;  %vm4311_vm8 = vcmask 1043456  }
 0x463   : > { %v906_v57 = vsel %vm382_vm1, %v898_v55, 0.0  ;;  %vm4312_vm11 = vmmov %vm4311_vm8 }
 0x464   : > { %v907_v59 = vadd.f32 %v906_v57, %v905_v56 }
 0x466   : > { %v909_v61 = vadd.f32 %v908_v60, %v907_v59  ;;  %v3216_v60 = vld [vmem:[#allocation7 + $0x68] sm:$0xff]  }
 0x468   : > { %v911_v63 = vadd.f32 %v910_v62, %v909_v61  ;;  %v347_v61 = vld [vmem:[%s3775_s29] sm:$0xff] }
 0x469   : > { %v1134_v62 = vpack.c.bf16 %v347_v61, %v347_v61 }
 0x46e   : > { %v2991_v2 = vpop.f32.mrb[4].mxu0 }
 0x46f   : > { %v856_v4 = vpop.f32.mrb[5].mxu0  ;;  %v903_v12 = vsel %vm3935_vm7, %v2991_v2, 0.0 }
 0x470   : > { %v901_v7 = vsel %vm3931_vm4, %v856_v4, 0.0  ;;  %v2992_v8 = vpop.f32.mrb[6].mxu0  ;;  %v916_v18 = vsel %vm382_vm1, %v903_v12, 0.0 }
 0x471   : > { %v912_v9 = vsel %vm382_vm1, %v901_v7, 0.0  ;;  %v859_v11 = vpop.f32.mrb[7].mxu0  ;;  %v904_v16 = vsel %vm3948_vm15, %v2992_v8, 0.0 }
 0x472   : > { %v913_v13 = vadd.f32 %v912_v9, %v911_v63  ;;  %v902_v14 = vsel %vm3941_vm2, %v859_v11, 0.0  ;;  %v918_v20 = vsel %vm382_vm1, %v904_v16, 0.0  ;;  %v2835_v63 = vld [vmem:[%s4269_s5 + $0x3] ss:$0 sm:$0xff] }
 0x473   : > { %v914_v15 = vsel %vm382_vm1, %v902_v14, 0.0 }
 0x474   : > { %v915_v17 = vadd.f32 %v914_v15, %v913_v13 }
 0x476   : > { %v917_v19 = vadd.f32 %v916_v18, %v915_v17  ;;  %v2841_v17 = vld [vmem:[%s4269_s5 + $0x4] ss:$0 sm:$0xff] }
 0x478   : > { %v919_v21 = vadd.f32 %v918_v20, %v917_v19 }
 0x47a   : > { %v920_v25 = vpack.c.bf16 %v919_v21, %v919_v21 }
 0x47c   : > { %3000 = vmatmul.mubr.msk.bf16.vlgmr.msra.gmra.mrb[8].mxu1 %vm382_vm1, %v920_v25 }
 0x47d   : > { %3004 = vmatpush3.bf16.msra.mxu1 %v3211_v22  ;;  %3007 = vmatprep.mubr.msk.bf16.mxu1 %vm3558_vm0, %v3557_v0 }
 0x47e   : > { %3005 = vmatprep.subr.bf16.mxu1 %v3557_v0 }
 0x481   : > { %3006 = vmatpush3.bf16.msra.mxu1 %v3212_v27 }
 0x482   : > { %3019 = vmatprep.subr.bf16.mxu1 %v3557_v0 }
 0x54f   : > { %v990_v34 = vpop.f32.mrb[8].mxu1 }
 0x550   : > { %v991_v36 = vadd.f32 %v2819_v32, %v990_v34  ;;  %v3001_v38 = vpop.f32.mrb[9].mxu1 }
 0x551   : > { %v993_v40 = vpop.f32.mrb[10].mxu1 }
 0x552   : > { %v996_v42 = vpack.c.bf16 %v991_v36, %v991_v36  ;;  %v3002_v43 = vpop.f32.mrb[11].mxu1 }
 0x554   : > { %3008 = vmatmul.mubr.msk.bf16.vlgmr.msra.gmra.mrb[12].mxu1 %vm1021_vm3, %v996_v42 }
 0x555   : > { %3025 = vmatprep.mubr.msk.bf16.mxu1 %vm3558_vm0, %v3557_v0  ;;  %3020 = vmatpush3.bf16.msra.mxu1 %v3218_v44 }
 0x556   : > { %3021 = vmatprep.subr.bf16.mxu1 %v3557_v0 }
 0x559   : > { %3022 = vmatpush3.bf16.msra.mxu1 %v3219_v46 }
 0x55a   : > { %3023 = vmatprep.subr.bf16.mxu1 %v3557_v0 }
 0x55d   : > { %3024 = vmatpush3.bf16.msra.mxu1 %v3220_v23 }
 0x560   : > { %3026 = vmatmul.mubr.msk.bf16.vlgmr.msra.gmra.mrb[16].mxu1 %vm382_vm1, %v3790_v6  ;;  %v3217_v6 = vld [vmem:[#allocation7 + $0x70] sm:$0xff]  }
 0x627   : > { %v1059_v50 = vpop.f32.mrb[12].mxu1 }
 0x628   : > { %v1060_v52 = vadd.f32 %v2825_v49, %v1059_v50  ;;  %v3009_v53 = vpop.f32.mrb[13].mxu1 }
 0x629   : > { %v1062_v55 = vpop.f32.mrb[14].mxu1 }
 0x62a   : > { %v1065_v56 = vmax.f32 %v1060_v52, 0.0  ;;  %v3010_v57 = vpop.f32.mrb[15].mxu1 }
 0x62c   : > { %v1066_v59 = vpack.c.bf16 %v1065_v56, %v1065_v56 }
 0x62e   : > { %3016 = vmatmul.mubr.msk.bf16.vlgmr.msra.gmra.mrb[8].mxu0 %vm1021_vm3, %v1066_v59 }
 0x62f   : > { %3030 = vmatpush3.bf16.msra.mxu0 %v3215_v58  ;;  %3035 = vmatprep.mubr.msk.bf16.mxu0 %vm3558_vm0, %v3557_v0 }
 0x630   : > { %3031 = vmatprep.subr.bf16.mxu0 %v3557_v0 }
 0x633   : > { %3032 = vmatpush3.bf16.msra.mxu0 %v3216_v60  ;;  %v1201_v2 = vpop.f32.mrb[16].mxu1 }
 0x634   : > { %3033 = vmatprep.subr.bf16.mxu0 %v3557_v0  ;;  %v1202_v4 = vadd.f32 %v2835_v63, %v1201_v2  ;;  %v3027_v7 = vpop.f32.mrb[17].mxu1 }
 0x635   : > { %v1204_v8 = vpop.f32.mrb[18].mxu1 }
 0x636   : > { %v1572_v9 = vpack.c.bf16 %v1202_v4, %v1202_v4  ;;  %v3028_v11 = vpop.f32.mrb[19].mxu1  ;;  %1208 = vrot.lane.b32.xlu0 %v1202_v4, %s3559_s8  ;;  %s3564_s8 = smov 64  }
 0x637   : > { %3034 = vmatpush3.bf16.msra.mxu0 %v3217_v6 }
 0x638   : > { %3049 = vmatprep.subr.bf16.mxu0 %v3557_v0  ;;  %3126 = vmatprep.subr.msk.bf16.mxu1 %vm4311_vm8, %v1572_v9  ;;  %v1586_v12 = vsel %vm4312_vm11, %v1572_v9, 0  ;;  %vm4316_vm8 = vmmov %vm4313_vm5 }
 0x639   : > { %3040 = vmatpush3.bf16.msra.mxu1 %v1586_v12  ;;  %vm4317_vm11 = vmmov %vm4313_vm5 }
 0x63a   : > { %3036 = vmatmul.mubr.msk.bf16.vlgmr.msra.gmra.mrb[12].mxu0 %vm382_vm1, %v1134_v62  ;;  %3067 = vmatprep.subr.bf16.mxu1 %v3557_v0 }
 0x63b   : > { %3055 = vmatprep.mubr.msk.bf16.mxu0 %vm3558_vm0, %v3557_v0 }
 0x6a8   : > { %v1209_v42 = vpop.permute.xlu0 %1208 }
 0x701   : > { %v3998_v13 = vpop.f32.mrb[8].mxu0 }
 0x702   : > { %v3017_v14 = vpop.f32.mrb[9].mxu0 }
 0x703   : > { %v1131_v15 = vpop.f32.mrb[10].mxu0 }
 0x704   : > { %v3018_v16 = vpop.f32.mrb[11].mxu0 }
 0x70d   : > { %v1312_v18 = vpop.f32.mrb[12].mxu0 }
 0x70e   : > { %v1313_v19 = vadd.f32 %v2841_v17, %v1312_v18  ;;  %v3037_v20 = vpop.f32.mrb[13].mxu0 }
 0x70f   : > { %v1315_v21 = vpop.f32.mrb[14].mxu0 }
 0x710   : > { %1318 = vxpose.xlu1.b32.start.end [1/1] (short) (narrow) %v1313_v19, 8  ;;  %v3038_v22 = vpop.f32.mrb[15].mxu0 }
 0x790   : > { %v1334_v25 = vpop.trf.xlu1 }
 0x791   : > { %v1353_v27 = vrot.slane %v1334_v25, %v3818_v26  ;;  %v1360_v28 = vrot.slane %v1334_v25, %v3822_v29  ;;  %v1367_v30 = vrot.slane %v1334_v25, %v3826_v31  ;;  %v1374_v32 = vrot.slane %v1334_v25, %v3830_v33 }
 0x792   : > { %v1381_v34 = vrot.slane %v1334_v25, %v3834_v35  ;;  %v1388_v36 = vrot.slane %v1334_v25, %v3838_v37  ;;  %v1395_v38 = vrot.slane %v1334_v25, %v3842_v39  ;;  %v1402_v40 = vrot.slane %v1334_v25, %v3846_v41 }
 0x793   : > { %1355 = vbcast.lane.b32.xlu0 %v1353_v27, 256 }
 0x797   : > { %1362 = vbcast.lane.b32.xlu0 %v1360_v28, 256 }
 0x79b   : > { %1369 = vbcast.lane.b32.xlu0 %v1367_v30, 256 }
 0x79f   : > { %1376 = vbcast.lane.b32.xlu0 %v1374_v32, 256 }
 0x7a3   : > { %1383 = vbcast.lane.b32.xlu0 %v1381_v34, 256 }
 0x7a7   : > { %1390 = vbcast.lane.b32.xlu0 %v1388_v36, 256 }
 0x7ab   : > { %1397 = vbcast.lane.b32.xlu0 %v1395_v38, 256 }
 0x7af   : > { %1404 = vbcast.lane.b32.xlu0 %v1402_v40, 256 }
 0x7cd   : > { %1211 = vxpose.xlu0.b32.start.end [1/1] (short) (narrow) %v1209_v42, 8 }
 0x805   : > { %v1356_v43 = vpop.permute.xlu0 %1355 }
 0x809   : > { %v1363_v44 = vpop.permute.xlu0 %1362 }
 0x80d   : > { %v1370_v46 = vpop.permute.xlu0 %1369 }
 0x811   : > { %v1377_v23 = vpop.permute.xlu0 %1376 }
 0x815   : > { %v1384_v49 = vpop.permute.xlu0 %1383 }
 0x819   : > { %v1391_v50 = vpop.permute.xlu0 %1390 }
 0x81d   : > { %v1398_v52 = vpop.permute.xlu0 %1397 }
 0x821   : > { %v1405_v53 = vpop.permute.xlu0 %1404 }
 0x84d   : > { %v1227_v55 = vpop.trf.xlu0 }
 0x84e   : > { %v1407_v56 = vcombine.high %v1227_v55, %v1227_v55  ;;  %v1414_v57 = vrot.slane %v1227_v55, %v3850_v54 }
 0x850   : > { %v1421_v58 = vrot.slane %v1407_v56, %v3850_v54  ;;  %v1422_v59 = vcombine.high %v1414_v57, %v1414_v57  ;;  %v1430_v60 = vrot.slane %v1414_v57, %v3850_v54 }
 0x852   : > { %v1423_v6 = vcombine.high %v1421_v58, %v1421_v58  ;;  %v1437_v61 = vrot.slane %v1421_v58, %v3850_v54  ;;  %v1444_v62 = vrot.slane %v1422_v59, %v3850_v54  ;;  %v1452_v63 = vcombine.high %v1430_v60, %v1430_v60 }
 0x853   : > { %v1459_v2 = vrot.slane %v1430_v60, %v3818_v26 }
 0x854   : > { %v1454_v4 = vcombine.high %v1444_v62, %v1444_v62  ;;  %v1463_v7 = vrot.slane %v1444_v62, %v3818_v26  ;;  %v1451_v8 = vrot.slane %v1423_v6, %v3850_v54  ;;  %v1467_v9 = vrot.slane %v1452_v63, %v3818_v26 }
 0x855   : > { %v1475_v11 = vrot.slane %v1437_v61, %v3818_v26  ;;  %v1496_v12 = vadd.f32 %v1459_v2, %v1356_v43  ;;  %v1453_v18 = vcombine.high %v1437_v61, %v1437_v61 }
 0x856   : > { %v1471_v14 = vrot.slane %v1454_v4, %v3818_v26  ;;  %v1497_v15 = vadd.f32 %v1463_v7, %v1363_v44  ;;  %v1498_v16 = vadd.f32 %v1467_v9, %v1370_v46  ;;  %v1479_v19 = vrot.slane %v1451_v8, %v3818_v26 }
 0x857   : > { %3288 = vtanh.f32 %v1496_v12  ;;  %v1500_v20 = vadd.f32 %v1475_v11, %v1384_v49  ;;  %v1455_v21 = vcombine.high %v1451_v8, %v1451_v8  ;;  %v1483_v22 = vrot.slane %v1453_v18, %v3818_v26 }
 0x858   : > { %v1499_v17 = vadd.f32 %v1471_v14, %v1377_v23  ;;  %3290 = vtanh.f32 %v1497_v15  ;;  %v1501_v25 = vadd.f32 %v1479_v19, %v1391_v50 }
 0x859   : > { %3292 = vtanh.f32 %v1498_v16  ;;  %v1487_v28 = vrot.slane %v1455_v21, %v3818_v26  ;;  %v1502_v30 = vadd.f32 %v1483_v22, %v1398_v52 }
 0x85a   : > { %3294 = vtanh.f32 %v1499_v17 }
 0x85b   : > { %3296 = vtanh.f32 %v1500_v20  ;;  %v1503_v42 = vadd.f32 %v1487_v28, %v1405_v53 }
 0x85c   : > { %3298 = vtanh.f32 %v1501_v25 }
 0x861   : > { %v3289_v27 = vpop.eup %3288 }
 0x862   : > { %v1512_v32 = vmul.f32 1.442695, %v3289_v27  ;;  %v3291_v34 = vpop.eup %3290 }
 0x863   : > { %v3293_v36 = vpop.eup %3292  ;;  %v1514_v38 = vmul.f32 1.442695, %v3291_v34 }
 0x864   : > { %3300 = vpow2.f32 %v1512_v32  ;;  %v3295_v40 = vpop.eup %3294  ;;  %v1516_v43 = vmul.f32 1.442695, %v3293_v36 }
 0x865   : > { %3302 = vtanh.f32 %v1502_v30  ;;  %v1518_v44 = vmul.f32 1.442695, %v3295_v40  ;;  %v3297_v46 = vpop.eup %3296 }
 0x866   : > { %3304 = vpow2.f32 %v1514_v38  ;;  %v1520_v23 = vmul.f32 1.442695, %v3297_v46  ;;  %v3299_v49 = vpop.eup %3298 }
 0x867   : > { %3306 = vpow2.f32 %v1516_v43  ;;  %v1522_v52 = vmul.f32 1.442695, %v3299_v49 }
 0x868   : > { %3308 = vtanh.f32 %v1503_v42 }
 0x869   : > { %3310 = vpow2.f32 %v1518_v44 }
 0x86a   : > { %3312 = vpow2.f32 %v1520_v23 }
 0x86b   : > { %3314 = vpow2.f32 %v1522_v52 }
 0x86e   : > { %v3301_v50 = vpop.eup %3300 }
 0x86f   : > { %v3303_v55 = vpop.eup %3302  ;;  %v1528_v56 = vsel %vm4313_vm5, %v3301_v50, 0.0 }
 0x870   : > { %v3305_v57 = vpop.eup %3304  ;;  %1529 = vadd.xlane.f32.xlu1 %v1528_v56  ;;  %v1524_v59 = vmul.f32 1.442695, %v3303_v55 }
 0x871   : > { %v3307_v58 = vpop.eup %3306  ;;  %v1531_v53 = vsel %vm4314_vm6, %v3305_v57, 0.0  ;;  %vm4318_vm6 = vmmov %vm4313_vm5 }
 0x872   : > { %1532 = vadd.xlane.f32.xlu0 %v1531_v53  ;;  %v3309_v60 = vpop.eup %3308  ;;  %v1534_v6 = vsel %vm4315_vm10, %v3307_v58, 0.0  ;;  %3316 = vpow2.f32 %v1524_v59  ;;  %vm4319_vm10 = vmmov %vm4313_vm5  ;;  %v3222_v53 = vld [vmem:[#allocation7 + $0x80] sm:$0xff]   ;;  %v3223_v59 = vld [vmem:[#allocation7 + $0x88] sm:$0xff]  }
 0x873   : > { %v3311_v61 = vpop.eup %3310  ;;  %v1526_v62 = vmul.f32 1.442695, %v3309_v60 }
 0x874   : > { %1535 = vadd.xlane.f32.xlu1 %v1534_v6  ;;  %v1537_v63 = vsel %vm4316_vm8, %v3311_v61, 0.0  ;;  %v3313_v2 = vpop.eup %3312  ;;  %vm4320_vm8 = vmmov %vm4313_vm5 }
 0x875   : > { %3318 = vpow2.f32 %v1526_v62  ;;  %v1540_v4 = vsel %vm4317_vm11, %v3313_v2, 0.0  ;;  %v3315_v7 = vpop.eup %3314  ;;  %vm4321_vm11 = vmmov %vm4313_vm5 }
 0x876   : > { %v1543_v8 = vsel %vm4313_vm5, %v3315_v7, 0.0 }
 0x878   : > { %1538 = vadd.xlane.f32.xlu1 %v1537_v63 }
 0x87c   : > { %1541 = vadd.xlane.f32.xlu1 %v1540_v4  ;;  %v3317_v9 = vpop.eup %3316 }
 0x87d   : > { %v1546_v11 = vsel %vm4318_vm6, %v3317_v9, 0.0  ;;  %vm4322_vm6 = vmmov %vm4313_vm5 }
 0x87f   : > { %v3319_v12 = vpop.eup %3318 }
 0x880   : > { %1544 = vadd.xlane.f32.xlu1 %v1543_v8  ;;  %v1549_v14 = vsel %vm4319_vm10, %v3319_v12, 0.0  ;;  %vm4323_vm10 = vcmp.lt.s32.totalorder %v3884_v45, 6 }
 0x884   : > { %1547 = vadd.xlane.f32.xlu1 %v1546_v11 }
 0x888   : > { %1550 = vadd.xlane.f32.xlu1 %v1549_v14 }
 0x8fd   : > { %v1530_v15 = vpop.xlane.xlu1 %1529 }
 0x8fe   : > { %3320 = vrcp.f32 %v1530_v15 }
 0x8ff   : > { %v1533_v16 = vpop.xlane.xlu0 %1532 }
 0x900   : > { %3322 = vrcp.f32 %v1533_v16 }
 0x901   : > { %v1536_v17 = vpop.xlane.xlu1 %1535 }
 0x902   : > { %3324 = vrcp.f32 %v1536_v17 }
 0x905   : > { %v1539_v18 = vpop.xlane.xlu1 %1538 }
 0x906   : > { %3326 = vrcp.f32 %v1539_v18 }
 0x908   : > { %v3321_v19 = vpop.eup %3320 }
 0x909   : > { %v1542_v20 = vpop.xlane.xlu1 %1541  ;;  %v1560_v22 = vmul.f32 %v3321_v19, %v3301_v50 }
 0x90a   : > { %v3323_v21 = vpop.eup %3322  ;;  %3328 = vrcp.f32 %v1542_v20 }
 0x90b   : > { %v1561_v25 = vmul.f32 %v3323_v21, %v3305_v57 }
 0x90c   : > { %v3325_v30 = vpop.eup %3324 }
 0x90d   : > { %v1545_v27 = vpop.xlane.xlu1 %1544  ;;  %v1568_v28 = vpack.c.bf16 %v1561_v25, %v1560_v22  ;;  %v1562_v34 = vmul.f32 %v3325_v30, %v3307_v58  ;;  %v3221_v58 = vld [vmem:[#allocation7 + $0x78] sm:$0xff]  }
 0x90e   : > { %3330 = vrcp.f32 %v1545_v27  ;;  %3050 = vmatpush3.bf16.msra.mxu0 %v3221_v58  ;;  %v2857_v58 = vld [vmem:[%s4269_s5 + $0x8] ss:$0 sm:$0xff] }
 0x90f   : > { %3041 = vmatprep.mubr.msk.bf16.mxu1 %vm4320_vm8, %v1568_v28  ;;  %3051 = vmatprep.subr.bf16.mxu0 %v3557_v0 }
 0x910   : > { %v3327_v32 = vpop.eup %3326 }
 0x911   : > { %v1563_v36 = vmul.f32 %v3327_v32, %v3311_v61  ;;  %v1548_v38 = vpop.xlane.xlu1 %1547 }
 0x912   : > { %3332 = vrcp.f32 %v1548_v38  ;;  %3052 = vmatpush3.bf16.msra.mxu0 %v3222_v53 }
 0x913   : > { %v1569_v40 = vpack.c.bf16 %v1563_v36, %v1562_v34  ;;  %3053 = vmatprep.subr.bf16.mxu0 %v3557_v0  ;;  %v3224_v36 = vld [vmem:[#allocation7 + $0xb0] sm:$0xff]  }
 0x914   : > { %v3329_v43 = vpop.eup %3328 }
 0x915   : > { %v1551_v42 = vpop.xlane.xlu1 %1550  ;;  %3042 = vmatmul.mubr.msk.bf16.vlgmr.msra.gmra.mrb[20].mxu1 %vm4321_vm11, %v1569_v40  ;;  %v1564_v46 = vmul.f32 %v3329_v43, %v3313_v2  ;;  %v2851_v40 = vld [vmem:[%s4269_s5 + $0x5] ss:$0 sm:$0xff] }
 0x916   : > { %3334 = vrcp.f32 %v1551_v42  ;;  %3054 = vmatpush3.bf16.msra.mxu0 %v3223_v59  ;;  %3068 = vmatpush3.bf16.msra.mxu1 %v3228_v5 }
 0x917   : > { %3059 = vmatprep.subr.bf16.mxu0 %v3557_v0  ;;  %3069 = vmatprep.subr.bf16.mxu1 %v3557_v0 }
 0x918   : > { %v3331_v44 = vpop.eup %3330 }
 0x919   : > { %v1565_v23 = vmul.f32 %v3331_v44, %v3315_v7 }
 0x91a   : > { %3070 = vmatpush3.bf16.msra.mxu1 %v3229_v10 }
 0x91b   : > { %v1570_v49 = vpack.c.bf16 %v1565_v23, %v1564_v46  ;;  %3083 = vmatprep.subr.bf16.mxu1 %v3557_v0  ;;  %v3226_v23 = vld [vmem:[#allocation7 + $0xd0] sm:$0xff]  }
 0x91c   : > { %v3333_v50 = vpop.eup %3332 }
 0x91d   : > { %3045 = vmatprep.mubr.msk.bf16.mxu1 %vm4313_vm5, %v1570_v49  ;;  %v1566_v55 = vmul.f32 %v3333_v50, %v3317_v9 }
 0x920   : > { %v3335_v52 = vpop.eup %3334 }
 0x921   : > { %v1567_v56 = vmul.f32 %v3335_v52, %v3319_v12  ;;  %v2830_v52 = vld [vmem:[%s4269_s5 + $0x7] ss:$0 sm:$0xff] }
 0x923   : > { %v1571_v57 = vpack.c.bf16 %v1567_v56, %v1566_v55  ;;  %v3227_v55 = vld [vmem:[#allocation7 + $0xd8] sm:$0xff]   ;;  %v4083_v56 = vadd.f32 %v2830_v52, %v3998_v13  ;;  %v3230_v13 = vld [vmem:[#allocation7 + $0xe0] sm:$0xff]  }
 0x925   : > { %3046 = vmatmul.mubr.msk.bf16.gmra.mrb[24].mxu1 %vm4322_vm6, %v1571_v57  ;;  %v1889_v57 = vpack.c.bf16 %v4083_v56, %v4083_v56 }
 0x926   : > { %3071 = vmatprep.mubr.msk.bf16.mxu1 %vm3558_vm0, %v3557_v0 }
 0x9e8   : > { %v3043_v60 = vpop.f32.mrb[20].mxu1 }
 0x9e9   : > { %v1622_v6 = vpop.f32.mrb[21].mxu1  ;;  %v1655_v2 = vsel %vm3893_vm9, %v3043_v60, 0.0 }
 0x9ea   : > { %v1653_v61 = vsel %vm4323_vm10, %v1622_v6, 0.0  ;;  %v3044_v62 = vpop.f32.mrb[22].mxu1  ;;  %v1664_v12 = vsel %vm382_vm1, %v1655_v2, 0.0  ;;  %v2867_v2 = vld [vmem:[%s4269_s5 + $0xa] ss:$0 sm:$0xff] }
 0x9eb   : > { %v1625_v63 = vpop.f32.mrb[23].mxu1  ;;  %v1661_v7 = vsel %vm382_vm1, %v1653_v61, 0.0  ;;  %v1656_v9 = vsel %vm3909_vm13, %v3044_v62, 0.0 }
 0x9ec   : > { %v1654_v4 = vsel %vm3901_vm12, %v1625_v63, 0.0  ;;  %v1666_v15 = vsel %vm382_vm1, %v1656_v9, 0.0 }
 0x9ed   : > { %v1662_v8 = vsel %vm382_vm1, %v1654_v4, 0.0 }
 0x9ee   : > { %v1663_v11 = vadd.f32 %v1662_v8, %v1661_v7 }
 0x9f0   : > { %v1665_v14 = vadd.f32 %v1664_v12, %v1663_v11 }
 0x9f2   : > { %v1667_v16 = vadd.f32 %v1666_v15, %v1665_v14  ;;  %v3231_v15 = vld [vmem:[#allocation7 + $0xe8] sm:$0xff]  }
 0x9f8   : > { %v3047_v17 = vpop.f32.mrb[24].mxu1 }
 0x9f9   : > { %v1638_v47 = vpop.f32.mrb[25].mxu1  ;;  %v1659_v51 = vsel %vm3935_vm7, %v3047_v17, 0.0 }
 0x9fa   : > { %v1657_v48 = vsel %vm3931_vm4, %v1638_v47, 0.0  ;;  %v3048_v18 = vpop.f32.mrb[26].mxu1  ;;  %v1672_v1 = vsel %vm382_vm1, %v1659_v51, 0.0  ;;  %v2872_v51 = vld [vmem:[%s4269_s5 + $0xb] ss:$0 sm:$0xff]  ;;  %vm4326_vm4 = vmmov %vm4313_vm5 }
 0x9fb   : > { %v1668_v19 = vsel %vm382_vm1, %v1657_v48, 0.0  ;;  %v1641_v20 = vpop.f32.mrb[27].mxu1  ;;  %v1660_v27 = vsel %vm3948_vm15, %v3048_v18, 0.0  ;;  %vm4327_vm7 = vmmov %vm4326_vm4 }
 0x9fc   : > { %v1669_v21 = vadd.f32 %v1668_v19, %v1667_v16  ;;  %v1658_v22 = vsel %vm3941_vm2, %v1641_v20, 0.0  ;;  %v1674_v32 = vsel %vm382_vm1, %v1660_v27, 0.0  ;;  %v2862_v16 = vld [vmem:[%s4269_s5 + $0x9] ss:$0 sm:$0xff]  ;;  %vm4328_vm9 = vmmov %vm4326_vm4 }
 0x9fd   : > { %v1670_v25 = vsel %vm382_vm1, %v1658_v22, 0.0  ;;  %vm4329_vm12 = vmmov %vm4326_vm4 }
 0x9fe   : > { %v1671_v28 = vadd.f32 %v1670_v25, %v1669_v21  ;;  %vm4330_vm13 = vmmov %vm4326_vm4 }
 0x9ff   : > { %vm4331_vm15 = vmmov %vm4326_vm4 }
 0xa00   : > { %v1673_v30 = vadd.f32 %v1672_v1, %v1671_v28  ;;  %vm4332_vm8 = vmmov %vm4326_vm4 }
 0xa01   : > { %vm4333_vm11 = vmmov %vm4326_vm4 }
 0xa02   : > { %v1675_v34 = vadd.f32 %v1674_v32, %v1673_v30  ;;  %vm4334_vm5 = vmmov %vm4326_vm4 }
 0xa03   : > { %vm4335_vm6 = vmmov %vm4326_vm4 }
 0xa04   : > { %v1676_v38 = vpack.c.bf16 %v1675_v34, %v1675_v34  ;;  %vm4336_vm10 = vmmov %vm4326_vm4 }
 0xa06   : > { %3056 = vmatmul.mubr.msk.bf16.vlgmr.msra.gmra.mrb[16].mxu0 %vm382_vm1, %v1676_v38  ;;  %vm4324_vm1 = vcmask 1043456  }
 0xa07   : > { %3060 = vmatpush3.bf16.msra.mxu0 %v3224_v36  ;;  %3063 = vmatprep.mubr.msk.bf16.mxu0 %vm3558_vm0, %v3557_v0  ;;  %vm4325_vm2 = vmmov %vm4324_vm1 }
 0xa08   : > { %3061 = vmatprep.subr.bf16.mxu0 %v3557_v0 }
 0xa0b   : > { %3062 = vmatpush3.bf16.msra.mxu0 %v3225_v3 }
 0xa0c   : > { %3075 = vmatprep.subr.bf16.mxu0 %v3557_v0 }
 0xad9   : > { %v1746_v42 = vpop.f32.mrb[16].mxu0 }
 0xada   : > { %v1747_v43 = vadd.f32 %v2851_v40, %v1746_v42  ;;  %v3057_v44 = vpop.f32.mrb[17].mxu0  ;;  %v3562_v40 = vmov 0  }
 0xadb   : > { %v1749_v46 = vpop.f32.mrb[18].mxu0 }
 0xadc   : > { %v1752_v49 = vpack.c.bf16 %v1747_v43, %v1747_v43  ;;  %v3058_v50 = vpop.f32.mrb[19].mxu0 }
 0xade   : > { %3064 = vmatmul.mubr.msk.bf16.vlgmr.msra.gmra.mrb[20].mxu0 %vm1021_vm3, %v1752_v49 }
 0xadf   : > { %3076 = vmatpush3.bf16.msra.mxu0 %v3226_v23  ;;  %3079 = vmatprep.mubr.msk.bf16.mxu0 %vm3558_vm0, %v3557_v0 }
 0xae0   : > { %3077 = vmatprep.subr.bf16.mxu0 %v3557_v0 }
 0xae3   : > { %3078 = vmatpush3.bf16.msra.mxu0 %v3227_v55 }
 0xae6   : > { %3080 = vmatmul.mubr.msk.bf16.vlgmr.msra.gmra.mrb[24].mxu0 %vm1021_vm3, %v1889_v57 }
 0xbb1   : > { %v1814_v53 = vpop.f32.mrb[20].mxu0 }
 0xbb2   : > { %v1815_v59 = vadd.f32 %v2857_v58, %v1814_v53  ;;  %v3065_v60 = vpop.f32.mrb[21].mxu0 }
 0xbb3   : > { %v1817_v6 = vpop.f32.mrb[22].mxu0 }
 0xbb4   : > { %v1820_v61 = vmax.f32 %v1815_v59, 0.0  ;;  %v3066_v62 = vpop.f32.mrb[23].mxu0 }
 0xbb6   : > { %v1821_v63 = vpack.c.bf16 %v1820_v61, %v1820_v61 }
 0xbb8   : > { %3072 = vmatmul.mubr.msk.bf16.vlgmr.msra.gmra.mrb[28].mxu1 %vm1021_vm3, %v1821_v63 }
 0xbb9   : > { %v1952_v4 = vpop.f32.mrb[24].mxu0  ;;  %3084 = vmatpush3.bf16.msra.mxu1 %v3230_v13  ;;  %3087 = vmatprep.mubr.msk.bf16.mxu1 %vm3558_vm0, %v3557_v0 }
 0xbba   : > { %v1953_v7 = vadd.f32 %v2867_v2, %v1952_v4  ;;  %v3081_v8 = vpop.f32.mrb[25].mxu0  ;;  %3085 = vmatprep.subr.bf16.mxu1 %v3557_v0 }
 0xbbb   : > { %v1955_v9 = vpop.f32.mrb[26].mxu0 }
 0xbbc   : > { %v2315_v11 = vpack.c.bf16 %v1953_v7, %v1953_v7  ;;  %1959 = vrot.lane.b32.xlu1 %v1953_v7, %s3561_s16  ;;  %v3082_v12 = vpop.f32.mrb[27].mxu0 }
 0xbbd   : > { %3086 = vmatpush3.bf16.msra.mxu1 %v3231_v15 }
 0xbbe   : > { %3127 = vmatprep.subr.msk.bf16.mxu0 %vm4324_vm1, %v2315_v11  ;;  %v2329_v14 = vsel %vm4325_vm2, %v2315_v11, 0  ;;  %3101 = vmatprep.subr.bf16.mxu1 %v3557_v0  ;;  %vm4337_vm1 = vmmov %vm4326_vm4  ;;  %vm2397_vm2 = vcmp.ge.s32.totalorder %v3884_v45, 8 }
 0xbbf   : > { %3092 = vmatpush3.bf16.msra.mxu0 %v2329_v14 }
 0xbc0   : > { %3109 = vmatprep.subr.bf16.mxu0 %v3557_v0 }
 0xc8b   : > { %v1883_v17 = vpop.f32.mrb[28].mxu1 }
 0xc8c   : > { %v4106_v47 = vadd.f32 %v2862_v16, %v1883_v17  ;;  %v3073_v48 = vpop.f32.mrb[29].mxu1 }
 0xc8d   : > { %v1886_v18 = vpop.f32.mrb[30].mxu1 }
 0xc8e   : > { %v1890_v19 = vpack.c.bf16 %v4106_v47, %v4106_v47  ;;  %v3074_v20 = vpop.f32.mrb[31].mxu1 }
 0xc90   : > { %3088 = vmatmul.mubr.msk.bf16.vlgmr.msra.gmra.mrb[32].mxu1 %vm1021_vm3, %v1890_v19 }
 0xc91   : > { %3105 = vmatprep.mubr.msk.bf16.mxu1 %vm3558_vm0, %v3557_v0 }
 0xd63   : > { %v2055_v21 = vpop.f32.mrb[32].mxu1 }
 0xd64   : > { %v2056_v22 = vadd.f32 %v2872_v51, %v2055_v21  ;;  %v3089_v25 = vpop.f32.mrb[33].mxu1 }
 0xd65   : > { %v2058_v27 = vpop.f32.mrb[34].mxu1 }
 0xd66   : > { %2061 = vxpose.xlu0.b32.start.end [1/1] (short) (narrow) %v2056_v22, 8  ;;  %v3090_v28 = vpop.f32.mrb[35].mxu1 }
 0xd8f   : > { %3200 = vset.pattern.permute.xlu0 %v3562_v40 }
 0xde6   : > { %v2077_v1 = vpop.trf.xlu0 }
 0xde7   : > { %v2096_v30 = vrot.slane %v2077_v1, %v3818_v26  ;;  %v2103_v32 = vrot.slane %v2077_v1, %v3822_v29  ;;  %v2110_v34 = vrot.slane %v2077_v1, %v3826_v31  ;;  %v2117_v36 = vrot.slane %v2077_v1, %v3830_v33  ;;  %v1960_v29 = vpop.permute.xlu1 %1959 }
 0xde8   : > { %v2124_v38 = vrot.slane %v2077_v1, %v3834_v35  ;;  %v2131_v3 = vrot.slane %v2077_v1, %v3838_v37  ;;  %v2138_v5 = vrot.slane %v2077_v1, %v3842_v39  ;;  %v2145_v10 = vrot.slane %v2077_v1, %v3846_v41 }
 0xde9   : > { %2098 = vbcast.lane.b32.xlu1 %v2096_v30, 256 }
 0xded   : > { %2105 = vbcast.lane.b32.xlu1 %v2103_v32, 256 }
 0xdf1   : > { %2112 = vbcast.lane.b32.xlu1 %v2110_v34, 256 }
 0xdf5   : > { %2119 = vbcast.lane.b32.xlu1 %v2117_v36, 256 }
 0xdf9   : > { %2126 = vbcast.lane.b32.xlu1 %v2124_v38, 256 }
 0xdfd   : > { %2133 = vbcast.lane.b32.xlu1 %v2131_v3, 256 }
 0xe01   : > { %2140 = vbcast.lane.b32.xlu1 %v2138_v5, 256 }
 0xe05   : > { %2147 = vbcast.lane.b32.xlu1 %v2145_v10, 256 }
 0xe2e   : > { %1962 = vxpose.xlu1.b32.start.end [1/1] (short) (narrow) %v1960_v29, 8 }
 0xe4c   : > { %3201 = vset.pattern.permute.xlu1 %v3562_v40 }
 0xe5b   : > { %v2099_v31 = vpop.permute.xlu1 %2098 }
 0xe5f   : > { %v2106_v33 = vpop.permute.xlu1 %2105 }
 0xe63   : > { %v2113_v42 = vpop.permute.xlu1 %2112 }
 0xe67   : > { %v2120_v43 = vpop.permute.xlu1 %2119 }
 0xe6b   : > { %v2127_v35 = vpop.permute.xlu1 %2126 }
 0xe6f   : > { %v2134_v44 = vpop.permute.xlu1 %2133 }
 0xe73   : > { %v2141_v46 = vpop.permute.xlu1 %2140 }
 0xe77   : > { %v2148_v37 = vpop.permute.xlu1 %2147 }
 0xeae   : > { %v1978_v23 = vpop.trf.xlu1 }
 0xeaf   : > { %v2150_v49 = vcombine.high %v1978_v23, %v1978_v23  ;;  %v2157_v39 = vrot.slane %v1978_v23, %v3850_v54 }
 0xeb1   : > { %v2164_v41 = vrot.slane %v2150_v49, %v3850_v54  ;;  %v2165_v50 = vcombine.high %v2157_v39, %v2157_v39  ;;  %v2173_v52 = vrot.slane %v2157_v39, %v3850_v54  ;;  %v349_v49 = vld [vmem:[%s344_s18] sm:$0x1]  ;;  %s3565_s18 = smov [#allocation8]  }
 0xeb2   : > { %s3480_s10 = sshll.u32 %s3565_s18, 4  ;;  %s3481_s10 = int_to_ptr.vmem [resolvable:$false] %s3480_s10 }
 0xeb3   : > { %v2166_v55 = vcombine.high %v2164_v41, %v2164_v41  ;;  %v2180_v57 = vrot.slane %v2164_v41, %v3850_v54  ;;  %v2187_v58 = vrot.slane %v2165_v50, %v3850_v54  ;;  %v2195_v53 = vcombine.high %v2173_v52, %v2173_v52  ;;  %s3482_s19 = scalar_lea.vmem %s3481_s10, 32  ;;  %p3483_p2 = scmp.lt.s32.totalorder %s4222_s17, %s3481_s10 }
 0xeb4   : > { %v2202_v59 = vrot.slane %v2173_v52, %v3818_v26  ;;  %v348_v52 = vld [vmem:[%s341_s30] sm:$0x1]  ;;  %p3484_p5 = scmp.lt.s32.totalorder %s3482_s19, %s3476_s25 }
 0xeb5   : > { %v2197_v60 = vcombine.high %v2187_v58, %v2187_v58  ;;  %v2206_v6 = vrot.slane %v2187_v58, %v3818_v26  ;;  %v2194_v61 = vrot.slane %v2166_v55, %v3850_v54  ;;  %v2210_v62 = vrot.slane %v2195_v53, %v3818_v26 }
 0xeb6   : > { %v2218_v13 = vrot.slane %v2180_v57, %v3818_v26  ;;  %v2239_v63 = vadd.f32 %v2202_v59, %v2099_v31  ;;  %v2196_v9 = vcombine.high %v2180_v57, %v2180_v57  ;;  %p3485_p1 = por %p3484_p5, %p3483_p2 }
 0xeb7   : > { %v2214_v2 = vrot.slane %v2197_v60, %v3818_v26  ;;  %v2240_v4 = vadd.f32 %v2206_v6, %v2106_v33  ;;  %v2241_v7 = vadd.f32 %v2210_v62, %v2113_v42  ;;  %v2222_v11 = vrot.slane %v2194_v61, %v3818_v26 }
 0xeb8   : > { %3336 = vtanh.f32 %v2239_v63  ;;  %v2243_v12 = vadd.f32 %v2218_v13, %v2127_v35  ;;  %v2198_v14 = vcombine.high %v2194_v61, %v2194_v61  ;;  %v2226_v54 = vrot.slane %v2196_v9, %v3818_v26  ;;  %p3486_p6 = pnand %p3485_p1, %p3479_p9 }
 0xeb9   : > { %v2242_v8 = vadd.f32 %v2214_v2, %v2120_v43  ;;  %3338 = vtanh.f32 %v2240_v4  ;;  %v2244_v15 = vadd.f32 %v2222_v11, %v2134_v44 }
 0xeba   : > { %3340 = vtanh.f32 %v2241_v7  ;;  %v2230_v17 = vrot.slane %v2198_v14, %v3818_v26  ;;  %v2245_v48 = vadd.f32 %v2226_v54, %v2141_v46 }
 0xebb   : > { %3342 = vtanh.f32 %v2242_v8 }
 0xebc   : > { %3344 = vtanh.f32 %v2243_v12  ;;  %v2246_v22 = vadd.f32 %v2230_v17, %v2148_v37 }
 0xebd   : > { %3346 = vtanh.f32 %v2244_v15 }
 0xec2   : > { %v3337_v16 = vpop.eup %3336 }
 0xec3   : > { %v2255_v18 = vmul.f32 1.442695, %v3337_v16  ;;  %v3339_v19 = vpop.eup %3338 }
 0xec4   : > { %v3341_v20 = vpop.eup %3340  ;;  %v2257_v51 = vmul.f32 1.442695, %v3339_v19 }
 0xec5   : > { %3348 = vpow2.f32 %v2255_v18  ;;  %v3343_v21 = vpop.eup %3342  ;;  %v2259_v25 = vmul.f32 1.442695, %v3341_v20 }
 0xec6   : > { %3350 = vtanh.f32 %v2245_v48  ;;  %v2261_v27 = vmul.f32 1.442695, %v3343_v21  ;;  %v3345_v28 = vpop.eup %3344  ;;  %v3232_v21 = vld [vmem:[#allocation7 + $0xf0] sm:$0xff]  }
 0xec7   : > { %3352 = vpow2.f32 %v2257_v51  ;;  %v2263_v1 = vmul.f32 1.442695, %v3345_v28  ;;  %v3347_v30 = vpop.eup %3346  ;;  %3102 = vmatpush3.bf16.msra.mxu1 %v3232_v21 }
 0xec8   : > { %3354 = vpow2.f32 %v2259_v25  ;;  %v2265_v34 = vmul.f32 1.442695, %v3347_v30  ;;  %3103 = vmatprep.subr.bf16.mxu1 %v3557_v0 }
 0xec9   : > { %3356 = vtanh.f32 %v2246_v22  ;;  %v3233_v22 = vld [vmem:[#allocation7 + $0xf8] sm:$0xff]  }
 0xeca   : > { %3358 = vpow2.f32 %v2261_v27 }
 0xecb   : > { %3360 = vpow2.f32 %v2263_v1  ;;  %3104 = vmatpush3.bf16.msra.mxu1 %v3233_v22  ;;  %v3239_v22 = vld [vmem:[#allocation7 + $0x128] sm:$0xff]  }
 0xecc   : > { %3362 = vpow2.f32 %v2265_v34 }
 0xecf   : > { %v3349_v32 = vpop.eup %3348 }
 0xed0   : > { %v3351_v36 = vpop.eup %3350  ;;  %v2271_v38 = vsel %vm4326_vm4, %v3349_v32, 0.0  ;;  %vm2396_vm4 = vcmp.ge.s32.totalorder %v3884_v45, 4 }
 0xed1   : > { %v3353_v3 = vpop.eup %3352  ;;  %2272 = vadd.xlane.f32.xlu0 %v2271_v38  ;;  %v2267_v29 = vmul.f32 1.442695, %v3351_v36 }
 0xed2   : > { %v3355_v5 = vpop.eup %3354  ;;  %v2274_v10 = vsel %vm4327_vm7, %v3353_v3, 0.0  ;;  %vm2402_vm7 = vcmp.lt.s32.totalorder %v3884_v45, 8 }
 0xed3   : > { %2275 = vadd.xlane.f32.xlu1 %v2274_v10  ;;  %v3357_v40 = vpop.eup %3356  ;;  %v2277_v31 = vsel %vm4328_vm9, %v3355_v5, 0.0  ;;  %3364 = vpow2.f32 %v2267_v29  ;;  %vm2401_vm9 = vcmp.lt.s32.totalorder %v3884_v45, 4 }
 0xed4   : > { %v3359_v33 = vpop.eup %3358  ;;  %v2269_v42 = vmul.f32 1.442695, %v3357_v40 }
 0xed5   : > { %2278 = vadd.xlane.f32.xlu0 %v2277_v31  ;;  %v2280_v43 = vsel %vm4329_vm12, %v3359_v33, 0.0  ;;  %v3361_v35 = vpop.eup %3360  ;;  %vm4338_vm12 = vcmp.lt.s32.totalorder %v3884_v45, 12 }
 0xed6   : > { %3366 = vpow2.f32 %v2269_v42  ;;  %v2283_v44 = vsel %vm4330_vm13, %v3361_v35, 0.0  ;;  %v3363_v46 = vpop.eup %3362  ;;  %vm2409_vm13 = vmand %vm2397_vm2, %vm4338_vm12  ;;  %vm4342_vm12 = vcmp.lt.s32.totalorder %v3884_v45, 24 }
 0xed7   : > { %v2286_v37 = vsel %vm4331_vm15, %v3363_v46, 0.0  ;;  %vm2408_vm15 = vmand %vm2396_vm4, %vm2402_vm7  ;;  %vm2400_vm7 = vcmp.ge.s32.totalorder %v3884_v45, 28 }
 0xed9   : > { %2281 = vadd.xlane.f32.xlu0 %v2280_v43 }
 0xedd   : > { %2284 = vadd.xlane.f32.xlu0 %v2283_v44  ;;  %v3365_v23 = vpop.eup %3364 }
 0xede   : > { %v2289_v39 = vsel %vm4332_vm8, %v3365_v23, 0.0  ;;  %vm4339_vm8 = vcmp.ge.s32.totalorder %v3884_v45, 12 }
 0xee0   : > { %v3367_v41 = vpop.eup %3366 }
 0xee1   : > { %2287 = vadd.xlane.f32.xlu0 %v2286_v37  ;;  %v2292_v50 = vsel %vm4333_vm11, %v3367_v41, 0.0 }
 0xee4   : > { %2537 = vperm.xlu1 %3201, %v349_v49  }
 0xee5   : > { %2290 = vadd.xlane.f32.xlu0 %v2289_v39 }
 0xee9   : > { %2293 = vadd.xlane.f32.xlu0 %v2292_v50 }
 0xeff   : > { %2515 = vperm.xlu0 %3200, %v348_v52  }
 0xf5e   : > { %v2273_v55 = vpop.xlane.xlu0 %2272 }
 0xf5f   : > { %3368 = vrcp.f32 %v2273_v55 }
 0xf60   : > { %v2276_v57 = vpop.xlane.xlu1 %2275 }
 0xf61   : > { %3370 = vrcp.f32 %v2276_v57 }
 0xf62   : > { %v2279_v58 = vpop.xlane.xlu0 %2278 }
 0xf63   : > { %3372 = vrcp.f32 %v2279_v58 }
 0xf66   : > { %v2282_v53 = vpop.xlane.xlu0 %2281 }
 0xf67   : > { %3374 = vrcp.f32 %v2282_v53 }
 0xf69   : > { %v3369_v59 = vpop.eup %3368 }
 0xf6a   : > { %v2285_v60 = vpop.xlane.xlu0 %2284  ;;  %v2303_v61 = vmul.f32 %v3369_v59, %v3349_v32  ;;  %v3234_v59 = vld [vmem:[#allocation7 + $0x100] sm:$0xff]  }
 0xf6b   : > { %v3371_v6 = vpop.eup %3370  ;;  %3376 = vrcp.f32 %v2285_v60  ;;  %v3235_v60 = vld [vmem:[#allocation7 + $0x108] sm:$0xff]  }
 0xf6c   : > { %v2304_v62 = vmul.f32 %v3371_v6, %v3353_v3  ;;  %v3236_v6 = vld [vmem:[#allocation7 + $0x110] sm:$0xff]  }
 0xf6d   : > { %v3373_v2 = vpop.eup %3372 }
 0xf6e   : > { %v2288_v13 = vpop.xlane.xlu0 %2287  ;;  %v2311_v63 = vpack.c.bf16 %v2304_v62, %v2303_v61  ;;  %v2305_v8 = vmul.f32 %v3373_v2, %v3355_v5  ;;  %v3237_v61 = vld [vmem:[#allocation7 + $0x118] sm:$0xff]  }
 0xf6f   : > { %3378 = vrcp.f32 %v2288_v13 }
 0xf70   : > { %3093 = vmatprep.mubr.msk.bf16.mxu0 %vm4334_vm5, %v2311_v63  ;;  %vm2398_vm5 = vcmp.ge.s32.totalorder %v3884_v45, 16  ;;  %v2881_v63 = vld [vmem:[%s4269_s5 + $0xc] ss:$0 sm:$0xff] }
 0xf71   : > { %v3375_v4 = vpop.eup %3374 }
 0xf72   : > { %v2291_v7 = vpop.xlane.xlu0 %2290  ;;  %v2306_v9 = vmul.f32 %v3375_v4, %v3359_v33 }
 0xf73   : > { %3380 = vrcp.f32 %v2291_v7 }
 0xf74   : > { %v2312_v11 = vpack.c.bf16 %v2306_v9, %v2305_v8  ;;  %v2538_v8 = vpop.permute.xlu1 %2537 }
 0xf75   : > { %v3377_v14 = vpop.eup %3376 }
 0xf76   : > { %v2294_v12 = vpop.xlane.xlu0 %2293  ;;  %3094 = vmatmul.mubr.msk.bf16.vlgmr.msra.gmra.mrb[28].mxu0 %vm4335_vm6, %v2312_v11  ;;  %v2307_v15 = vmul.f32 %v3377_v14, %v3361_v35  ;;  %vm2404_vm6 = vcmp.lt.s32.totalorder %v3884_v45, 20 }
 0xf77   : > { %3382 = vrcp.f32 %v2294_v12  ;;  %vm2411_vm2 = vmand %vm2398_vm5, %vm2404_vm6  ;;  %3110 = vmatpush3.bf16.msra.mxu0 %v3234_v59 }
 0xf78   : > { %3111 = vmatprep.subr.bf16.mxu0 %v3557_v0 }
 0xf79   : > { %v3379_v54 = vpop.eup %3378 }
 0xf7a   : > { %v2308_v16 = vmul.f32 %v3379_v54, %v3363_v46 }
 0xf7b   : > { %3112 = vmatpush3.bf16.msra.mxu0 %v3235_v60 }
 0xf7c   : > { %v2313_v17 = vpack.c.bf16 %v2308_v16, %v2307_v15  ;;  %3113 = vmatprep.subr.bf16.mxu0 %v3557_v0 }
 0xf7d   : > { %v3381_v48 = vpop.eup %3380 }
 0xf7e   : > { %3097 = vmatprep.mubr.msk.bf16.mxu0 %vm4336_vm10, %v2313_v17  ;;  %v2309_v19 = vmul.f32 %v3381_v48, %v3365_v23  ;;  %vm2405_vm10 = vcmp.lt.s32.totalorder %v3884_v45, 28  ;;  %v2516_v4 = vpop.permute.xlu0 %2515  ;;  %v3238_v48 = vld [vmem:[#allocation7 + $0x120] sm:$0xff]  }
 0xf7f   : > { %vm4180_vm4 = vmand %vm877_vm14, %vm2405_vm10  ;;  %3114 = vmatpush3.bf16.msra.mxu0 %v3236_v6  ;;  %vm2526_vm14 = vcmp.lt.s32.totalorder %v3815_v24, 4  ;;  %v2521_v12 = vrot.slane %v2516_v4, %v3818_v26 }
 0xf80   : > { %3115 = vmatprep.subr.bf16.mxu0 %v3557_v0  ;;  %v2527_v62 = vsel %vm2526_vm14, %v4106_v47, 0.0  ;;  %v2543_v47 = vrot.slane %v2538_v8, %v3818_v26 }
 0xf81   : > { %v3383_v18 = vpop.eup %3382  ;;  %v2528_v13 = vsel %vm1021_vm3, %v2527_v62, 0.0  ;;  %3384 = vrcp.f32 %v2521_v12 }
 0xf82   : > { %v2310_v20 = vmul.f32 %v3383_v18, %v3367_v41  ;;  %v2529_v2 = vrot.slane %v2528_v13, 4  ;;  %3386 = vrcp.f32 %v2543_v47 }
 0xf83   : > { %3116 = vmatpush3.bf16.msra.mxu0 %v3237_v61 }
 0xf84   : > { %v2314_v51 = vpack.c.bf16 %v2310_v20, %v2309_v19  ;;  %3117 = vmatprep.subr.bf16.mxu0 %v3557_v0  ;;  %v2530_v54 = vadd.f32 %v2529_v2, %v2528_v13 }
 0xf86   : > { %3098 = vmatmul.mubr.msk.bf16.gmra.mrb[32].mxu0 %vm4337_vm1, %v2314_v51  ;;  %vm2399_vm1 = vcmp.ge.s32.totalorder %v3884_v45, 20  ;;  %v2531_v18 = vrot.slane %v2530_v54, 2 }
 0xf87   : > { %3121 = vmatprep.mubr.msk.bf16.mxu0 %vm3558_vm0, %v3557_v0  ;;  %vm2403_vm0 = vcmp.lt.s32.totalorder %v3884_v45, 16  ;;  %3118 = vmatpush3.bf16.msra.mxu0 %v3238_v48 }
 0xf88   : > { %vm2410_vm11 = vmand %vm4339_vm8, %vm2403_vm0  ;;  %3119 = vmatprep.subr.bf16.mxu0 %v3557_v0  ;;  %v2532_v51 = vadd.f32 %v2531_v18, %v2530_v54  ;;  %vm2617_vm8 = vcmask 785408  }
 0xf8b   : > { %3120 = vmatpush3.bf16.msra.mxu0 %v3239_v22  ;;  %v3385_v26 = vpop.eup %3384 }
0x1049   : > { %v3095_v25 = vpop.f32.mrb[28].mxu0 }
0x104a   : > { %v2365_v27 = vpop.f32.mrb[29].mxu0  ;;  %v2417_v32 = vsel %vm2409_vm13, %v3095_v25, 0.0  ;;  %vm2412_vm13 = vmand %vm2399_vm1, %vm4342_vm12 }
0x104b   : > { %v2415_v28 = vsel %vm2401_vm9, %v2365_v27, 0.0  ;;  %v3096_v1 = vpop.f32.mrb[30].mxu0  ;;  %v2426_v10 = vsel %vm1021_vm3, %v2417_v32, 0.0  ;;  %vm2406_vm9 = vcmp.lt.s32.totalorder %v3884_v45, 32 }
0x104c   : > { %v2368_v30 = vpop.f32.mrb[31].mxu0  ;;  %v2423_v36 = vsel %vm1021_vm3, %v2415_v28, 0.0  ;;  %v2418_v3 = vsel %vm2410_vm11, %v3096_v1, 0.0  ;;  %vm2414_vm0 = vmand %vm2400_vm7, %vm2406_vm9  ;;  %v2533_v28 = vrot.slane %v2532_v51, 1 }
0x104d   : > { %v2416_v34 = vsel %vm2408_vm15, %v2368_v30, 0.0  ;;  %v2428_v40 = vsel %vm1021_vm3, %v2418_v3, 0.0  ;;  %v3387_v30 = vpop.eup %3386  ;;  %vm2564_vm15 = vcmask 523264  }
0x104e   : > { %v2424_v38 = vsel %vm1021_vm3, %v2416_v34, 0.0  ;;  %v2534_v32 = vadd.f32 %v2533_v28, %v2532_v51 }
0x104f   : > { %v2425_v5 = vadd.f32 %v2424_v38, %v2423_v36  ;;  %v2506_v36 = vsel %vm1021_vm3, %v4083_v56, 0.0  ;;  %v2885_v56 = vld [vmem:[%s4269_s5 + $0xd] sm:$0x1] }
0x1050   : > { %v2545_v34 = vmul.f32 %v3387_v30, %v2534_v32  ;;  %v2507_v0 = vrot.slane %v2506_v36, 4 }
0x1051   : > { %v2427_v29 = vadd.f32 %v2426_v10, %v2425_v5 }
0x1052   : > { %v2508_v38 = vadd.f32 %v2507_v0, %v2506_v36 }
0x1053   : > { %v2429_v31 = vadd.f32 %v2428_v40, %v2427_v29 }
0x1054   : > { %v2509_v3 = vrot.slane %v2508_v38, 2 }
0x1056   : > { %v2510_v5 = vadd.f32 %v2509_v3, %v2508_v38 }
0x1058   : > { %v2511_v10 = vrot.slane %v2510_v5, 1 }
0x1059   : > { %v3099_v33 = vpop.f32.mrb[32].mxu0 }
0x105a   : > { %v2381_v43 = vpop.f32.mrb[33].mxu0  ;;  %v2421_v23 = vsel %vm4180_vm4, %v3099_v33, 0.0  ;;  %v2512_v29 = vadd.f32 %v2511_v10, %v2510_v5 }
0x105b   : > { %v2419_v35 = vsel %vm2411_vm2, %v2381_v43, 0.0  ;;  %v3100_v44 = vpop.f32.mrb[34].mxu0  ;;  %v2434_v55 = vsel %vm1021_vm3, %v2421_v23, 0.0 }
0x105c   : > { %v2430_v46 = vsel %vm1021_vm3, %v2419_v35, 0.0  ;;  %v2384_v37 = vpop.f32.mrb[35].mxu0  ;;  %v2422_v50 = vsel %vm2414_vm0, %v3100_v44, 0.0 }
0x105d   : > { %v2431_v49 = vadd.f32 %v2430_v46, %v2429_v31  ;;  %v2420_v39 = vsel %vm2412_vm13, %v2384_v37, 0.0  ;;  %v2436_v45 = vsel %vm1021_vm3, %v2422_v50, 0.0  ;;  %v2523_v31 = vmul.f32 %v3385_v26, %v2512_v29 }
0x105e   : > { %v2432_v41 = vsel %vm1021_vm3, %v2420_v39, 0.0 }
0x105f   : > { %v2433_v52 = vadd.f32 %v2432_v41, %v2431_v49 }
0x1061   : > { %v2435_v57 = vadd.f32 %v2434_v55, %v2433_v52 }
0x1063   : > { %v2437_v58 = vadd.f32 %v2436_v45, %v2435_v57 }
0x1065   : > { %v2438_v53 = vpack.c.bf16 %v2437_v58, %v2437_v58 }
0x1067   : > { %3106 = vmatmul.mubr.msk.bf16.vlgmr.msra.gmra.mrb[36].mxu1 %vm1021_vm3, %v2438_v53 }
0x113a   : > { %v2500_v7 = vpop.f32.mrb[36].mxu1 }
0x113b   : > { %v2501_v9 = vadd.f32 %v2881_v63, %v2500_v7  ;;  %v3107_v11 = vpop.f32.mrb[37].mxu1 }
0x113c   : > { %v2503_v14 = vpop.f32.mrb[38].mxu1 }
0x113d   : > { %v2546_v15 = vsel %vm2526_vm14, %v2501_v9, 0.0  ;;  %v3108_v24 = vpop.f32.mrb[39].mxu1 }
0x113e   : > { %v2547_v16 = vsel %vm1021_vm3, %v2546_v15, 0.0 }
0x113f   : > { %v2548_v17 = vrot.slane %v2547_v16, 4 }
0x1141   : > { %v2549_v19 = vadd.f32 %v2548_v17, %v2547_v16 }
0x1143   : > { %v2550_v20 = vrot.slane %v2549_v19, 2 }
0x1145   : > { %v2551_v21 = vadd.f32 %v2550_v20, %v2549_v19 }
0x1147   : > { %v2552_v25 = vrot.slane %v2551_v21, 1 }
0x1149   : > { %v2553_v27 = vadd.f32 %v2552_v25, %v2551_v21 }
0x114b   : > { %v2554_v1 = vmul.f32 %v3385_v26, %v2553_v27 }
0x114d   : > { %2556 = vrot.lane.b32.xlu1 %v2554_v1, %s3563_s26 }
0x1151   : > { %2560 = vrot.lane.b32.xlu1 %v2545_v34, %s3564_s8 }
0x11bf   : > { %v2557_v40 = vpop.permute.xlu1 %2556 }
0x11c0   : > { %v2563_v33 = vsel %vm1021_vm3, %v2523_v31, %v2557_v40 }
0x11c3   : > { %v2561_v42 = vpop.permute.xlu1 %2560 }
0x11c4   : > { %v2565_v43 = vsel %vm2564_vm15, %v2563_v33, %v2561_v42 }
0x11c5   : > { %v2566_v35 = vpack.c.bf16 %v2565_v43, %v2565_v43 }
0x11c7   : > { %3122 = vmatmul.mubr.msk.bf16.vlgmr.msra.gmra.mrb[36].mxu0 %vm2617_vm8, %v2566_v35 }
0x129a   : > { %v2655_v44 = vpop.f32.mrb[36].mxu0 }
0x129b   : > { %v2656_v46 = vadd.f32 %v2885_v56, %v2655_v44  ;;  %v3123_v37 = vpop.f32.mrb[37].mxu0 }
0x129c   : > { %v2658_v23 = vpop.f32.mrb[38].mxu0 }
0x129d   : > { %2661 = vst [vmem:[%s338_s23] sm:$0x1] %v2656_v46  ;;  %v3124_v49 = vpop.f32.mrb[39].mxu0 }
0x129e   : > { %3489 = shalt.err (!%p3486_p6)
}
0x129f   : > { %s3490_s4 = scalar_lea.hbm %s4220_s12, 16  ;;  %s3494_s27 = scalar_lea.hbm %s4270_s6, 32 }
0x12a0   : > { %p3491_p8 = scmp.ne.s32.totalorder %s4220_s12, %s3490_s4  ;;  %p3495_p12 = scmp.lt.u32.totalorder %s4220_s12, %s4270_s6 }
0x12a1   : > { %p3496_p11 = scmp.lt.u32.totalorder %s3494_s27, %s3490_s4  ;;  %p3498_p13 = scmp.lt.u32.totalorder %s3490_s4, %s4220_s12 }
0x12a2   : > { %p3492_p4 = pnand %p3491_p8, %p4343_p3 }
0x12a3   : > { %p3497_p10 = por %p3496_p11, %p3495_p12 }
0x12a4   : > { %p3493_p0 = pneg %p3492_p4 }
0x12a5   : > { %p3499_p7 = por %p3498_p13, %p3497_p10 }
0x12a7   : > { %p3500_p9 = pnand %p3499_p7, %p3493_p0 }
0x12a9   : > { %3503 = shalt.err (!%p3500_p9)
}
0x12aa   : > { %3136 = dma.vmem_to_hbm [thread:$0]  (%p4343_p3), %s4222_s17, 16, %s4220_s12, %s2663_s13  }
0x12ab PF: > { %s2687_s15 = sand.u32 1, %s3538_s21   ;;  %p4344_p2 = scmp.ne.s32.totalorder %s4285_s28, 0 }
0x12ac   : > { %p4345_p5 = scmp.ge.s32.totalorder %s3550_s24, 2  ;;  %s2688_s16 = scalar_lea.sflag [#allocation4], %s2687_s15 }
0x12ae   : > { %p3150_p1 = pnand %p4345_p5, %p4344_p2 }
0x12b0   : > { %3533 = dma.done.wait (!%p3150_p1), %s2688_s16, 16  }
0x12b1   : > { %3535 = vsyncadd (!%p3150_p1), %s2688_s16, 4294967280  ;;  %s4346_s20 = sld [smem:[#allocation13_spill]]  ;;  %s4347_s23 = sld [smem:[#allocation14_spill]] }
0x12b2   : > { %p22_p6 = scmp.ge.s32.totalorder %s3657_s9, 4   ;;  %s4348_s21 = smov %s3542_s22 }
0x12b3   : > { %s4350_s24 = smov %s3657_s9 }
0x12b4   :  { %24 = sbr.rel (!%p22_p6) target bundleno = 9 (0x9), region = 125 }
0x12b7   : > { %s4349_s22 = smov %s4346_s20 }
0x12bb   :  { %2692 = vsyncpa [#allocation3], 1 }
0x12bc   :  { %2694 = vsyncpa [#allocation3 + $0x1], 1 }
0x12bd   :  { %2695 = vsyncpa [#allocation6], 1 }
0x12be   :  { %2697 = vsyncpa [#allocation6 + $0x1], 1 }
0x12bf   :  { %2698 = vsyncpa [#allocation4], 1 }
0x12c0   :  { %2700 = vsyncpa [#allocation4 + $0x1], 1 }

</bundles_post_ra>
